<compile_context>
chip_gen: v5e
topology: v5e:2x2
jax: 0.10.0
libtpu: 0.0.40
codegen_flags: <defaults>
</compile_context>

<pallas_src>
import jax
import jax.numpy as jnp
from jax.experimental import pallas as pl
from jax.experimental.pallas import tpu as pltpu


# ----------------------------- fused kernel ----------------------------------
def make_gru_pred_kernel(num_layers, seq, batch, hidden, out_dim):
    """Builds the fused kernel body.

    Ref order:
      x_ref      : (S, B, in_dim)    time-major input
      w_ih0_ref  : (in_dim, 3H)      layer-0 input weights, gates [r | z | n]
      w_ihr_ref  : (L-1, H, 3H)      input weights for layers 1..L-1 (if L>1)
      w_hh_ref   : (L, H, 3H)        recurrent weights
      b_ref      : (L, 2, 3H)        row0 = [b_ir+b_hr, b_iz+b_hz, b_in]
                                     row1 = [0, 0, b_hn]
      wlin_ref   : (S, H, out)       Linear weight, per-timestep slabs
      blin_ref   : (1, out)
      out_ref    : (B, out)
    """
    L, S, B, H = num_layers, seq, batch, hidden
    H2, H3 = 2 * hidden, 3 * hidden

    def kernel(*refs):
        it = iter(refs)
        x_ref = next(it)
        w_ih0_ref = next(it)
        w_ihr_ref = next(it) if L > 1 else None
        w_hh_ref = next(it)
        b_ref = next(it)
        wlin_ref = next(it)
        blin_ref = next(it)
        out_ref = next(it)

        # Load per-layer weights/biases once; they stay live across the
        # (small) fully unrolled loop.
        w_ih = [w_ih0_ref[...]] + [w_ihr_ref[l - 1] for l in range(1, L)]
        w_hh = [w_hh_ref[l] for l in range(L)]
        gi_b, gh_b = [], []
        for l in range(L):
            b_l = b_ref[l]                     # (2, 3H)
            gi_b.append(b_l[0:1, :])           # [b_ir+b_hr, b_iz+b_hz, b_in]
            gh_b.append(b_l[1:2, :])           # [0, 0, b_hn]

        def gru_cell(l, gi_t, h_prev, first):
            """One GRU step; gi_t already carries all input-side biases."""
            if first:                          # h_prev == 0: skip the matmul
                gh = gh_b[l]                   # (1, 3H) -> broadcasts
            else:
                gh = jnp.dot(h_prev, w_hh[l],
                             preferred_element_type=jnp.float32) + gh_b[l]
            # r and z share one fused sigmoid over 2H lanes.
            rz = jax.nn.sigmoid(gi_t[:, :H2] + gh[:, :H2])
            r, z = rz[:, :H], rz[:, H:]
            n = jnp.tanh(gi_t[:, H2:] + r * gh[:, H2:])
            if first:
                return (1.0 - z) * n           # h_prev == 0
            return (1.0 - z) * n + z * h_prev

        h = [None] * L
        acc = jnp.zeros((B, out_dim), jnp.float32)

        # Wavefront over time: layer l at step t needs only h[l-1] at step t
        # and h[l] at step t-1, so the two recurrent chains overlap in the
        # unrolled schedule.  gi dots are h-independent (off the critical
        # path); the Linear accumulation rides the otherwise idle MXU.
        for t in range(S):
            first = t == 0
            inp = x_ref[t]                                     # (B, in_dim)
            for l in range(L):
                gi_t = jnp.dot(inp, w_ih[l],
                               preferred_element_type=jnp.float32) + gi_b[l]
                h[l] = gru_cell(l, gi_t, h[l], first)
                inp = h[l]
            acc = acc + jnp.dot(inp, wlin_ref[t],
                                preferred_element_type=jnp.float32)

        out_ref[...] = (acc + blin_ref[...]).astype(out_ref.dtype)

    return kernel


# ------------------------------ model wrapper ---------------------------------
def gru_pred_forward(params, x):
    """x: (batch, seq, input_dim) -> (batch, output_size). One fused pallas_call."""
    batch, seq, input_dim = x.shape
    L = len(params["gru"])
    H = params["gru"][0]["w_hh"].shape[1]
    out_dim = params["w_lin"].shape[0]
    H3 = 3 * H

    # Time-major input: x3d[t, b, :] == x[b, t, :]
    x3d = jnp.transpose(x, (1, 0, 2))

    # Fused, pre-transposed weights; torch row blocks [W_r; W_z; W_n] become
    # lane blocks [r | z | n] after a plain transpose.
    w_ih0 = params["gru"][0]["w_ih"].T                                   # (in, 3H)
    w_ih_rest = (jnp.stack([params["gru"][l]["w_ih"].T for l in range(1, L)])
                 if L > 1 else None)                                     # (L-1, H, 3H)
    w_hh_all = jnp.stack([params["gru"][l]["w_hh"].T for l in range(L)]) # (L, H, 3H)

    biases = []
    for l in range(L):
        b_ih = params["gru"][l]["b_ih"]
        b_hh = params["gru"][l]["b_hh"]
        zeros_h = jnp.zeros((H,), b_hh.dtype)
        gi_bias = b_ih + jnp.concatenate([b_hh[:2 * H], zeros_h])        # (3H,)
        gh_bias = jnp.concatenate([zeros_h, zeros_h, b_hh[2 * H:]])      # (3H,)
        biases.append(jnp.stack([gi_bias, gh_bias]))                     # (2, 3H)
    b_all = jnp.stack(biases)                                            # (L, 2, 3H)

    # Linear folded per-timestep: out = sum_t h_t @ wlin3[t] + blin.
    wlin3 = params["w_lin"].T.reshape(seq, H, out_dim)                   # (S, H, out)
    blin = params["b_lin"].reshape(1, out_dim)

    call_args = [x3d, w_ih0]
    in_specs = [
        pl.BlockSpec((seq, batch, input_dim), lambda i: (0, 0, 0)),
        pl.BlockSpec((input_dim, H3), lambda i: (0, 0)),
    ]
    if L > 1:
        call_args.append(w_ih_rest)
        in_specs.append(pl.BlockSpec((L - 1, H, H3), lambda i: (0, 0, 0)))
    call_args += [w_hh_all, b_all, wlin3, blin]
    in_specs += [
        pl.BlockSpec((L, H, H3), lambda i: (0, 0, 0)),
        pl.BlockSpec((L, 2, H3), lambda i: (0, 0, 0)),
        pl.BlockSpec((seq, H, out_dim), lambda i: (0, 0, 0)),
        pl.BlockSpec((1, out_dim), lambda i: (0, 0)),
    ]

    kernel = make_gru_pred_kernel(L, seq, batch, H, out_dim)
    return pl.pallas_call(
        kernel,
        out_shape=jax.ShapeDtypeStruct((batch, out_dim), jnp.float32),
        grid=(1,),
        in_specs=in_specs,
        out_specs=pl.BlockSpec((batch, out_dim), lambda i: (0, 0)),
        compiler_params=pltpu.CompilerParams(dimension_semantics=("arbitrary",)),
    )(*call_args)


# ------------------------------ params / reference ----------------------------
def init_params(key, input_dim, seq_length, hidden_size, num_layers, output_size):
    k = 1.0 / jnp.sqrt(jnp.float32(hidden_size))
    params = {"gru": []}
    keys = jax.random.split(key, 4 * num_layers + 2)
    for layer in range(num_layers):
        in_dim = input_dim if layer == 0 else hidden_size
        kk = keys[4 * layer: 4 * layer + 4]
        params["gru"].append({
            "w_ih": jax.random.uniform(kk[0], (3 * hidden_size, in_dim),
                                       jnp.float32, -k, k),
            "w_hh": jax.random.uniform(kk[1], (3 * hidden_size, hidden_size),
                                       jnp.float32, -k, k),
            "b_ih": jax.random.uniform(kk[2], (3 * hidden_size,),
                                       jnp.float32, -k, k),
            "b_hh": jax.random.uniform(kk[3], (3 * hidden_size,),
                                       jnp.float32, -k, k),
        })
    kl = 1.0 / jnp.sqrt(jnp.float32(hidden_size * seq_length))
    params["w_lin"] = jax.random.uniform(keys[-2], (output_size, hidden_size * seq_length),
                                         jnp.float32, -kl, kl)
    params["b_lin"] = jax.random.uniform(keys[-1], (output_size,),
                                         jnp.float32, -kl, kl)
    return params


def gru_pred_reference(params, x):
    """Pure-JAX reference matching PyTorch GRU + Linear semantics."""
    batch, seq, _ = x.shape
    h_in = x
    for layer in params["gru"]:
        H = layer["w_hh"].shape[1]
        hidden = jnp.zeros((batch, H), jnp.float32)
        outs = []
        for t in range(seq):
            gi = h_in[:, t, :] @ layer["w_ih"].T + layer["b_ih"]
            gh = hidden @ layer["w_hh"].T + layer["b_hh"]
            r = jax.nn.sigmoid(gi[:, :H] + gh[:, :H])
            z = jax.nn.sigmoid(gi[:, H:2 * H] + gh[:, H:2 * H])
            n = jnp.tanh(gi[:, 2 * H:] + r * gh[:, 2 * H:])
            hidden = (1.0 - z) * n + z * hidden
            outs.append(hidden)
        h_in = jnp.stack(outs, axis=1)
    flat = h_in.reshape(batch, -1)
    return flat @ params["w_lin"].T + params["b_lin"]


if __name__ == "__main__":
    input_dim = 4
    seq_length = 8
    hidden_size = 32
    no_of_hidden_layers = 2
    output_size = 10
    batch = 2

    key = jax.random.PRNGKey(0)
    pkey, xkey = jax.random.split(key)
    params = init_params(pkey, input_dim, seq_length, hidden_size,
                         no_of_hidden_layers, output_size)
    x = jax.random.normal(xkey, (batch, seq_length, input_dim), jnp.float32)

    out = gru_pred_forward(params, x)
    out = jax.block_until_ready(out)

    ref = gru_pred_reference(params, x)
    assert out.shape == (batch, output_size)
    assert jnp.allclose(out, ref, atol=1e-4, rtol=1e-4), "mismatch vs JAX reference"

    print("KERNEL_OK")
</pallas_src>

<mosaic_0001>
module attributes {stable_mosaic.version = 11 : i64} {
  func.func @kernel(%arg0: i32, %arg1: memref<8x2x4xf32, #tpu.memory_space<vmem>>, %arg2: memref<4x96xf32, #tpu.memory_space<vmem>>, %arg3: memref<1x32x96xf32, #tpu.memory_space<vmem>>, %arg4: memref<2x32x96xf32, #tpu.memory_space<vmem>>, %arg5: memref<2x2x96xf32, #tpu.memory_space<vmem>>, %arg6: memref<8x32x10xf32, #tpu.memory_space<vmem>>, %arg7: memref<1x10xf32, #tpu.memory_space<vmem>>, %arg8: memref<2x10xf32, #tpu.memory_space<vmem>>) attributes {dimension_semantics = [#tpu.dimension_semantics<arbitrary>], iteration_bounds = array<i64: 1>, scalar_prefetch = 0 : i64, scratch_operands = 0 : i64, tpu.core_type = #tpu.core_type<tc>, window_params = [{pipeline_mode = #tpu.pipeline_mode<synchronous>, transform_indices = @transform_0, window_bounds = array<i64: 8, 2, 4>}, {pipeline_mode = #tpu.pipeline_mode<synchronous>, transform_indices = @transform_1, window_bounds = array<i64: 4, 96>}, {pipeline_mode = #tpu.pipeline_mode<synchronous>, transform_indices = @transform_2, window_bounds = array<i64: 1, 32, 96>}, {pipeline_mode = #tpu.pipeline_mode<synchronous>, transform_indices = @transform_3, window_bounds = array<i64: 2, 32, 96>}, {pipeline_mode = #tpu.pipeline_mode<synchronous>, transform_indices = @transform_4, window_bounds = array<i64: 2, 2, 96>}, {pipeline_mode = #tpu.pipeline_mode<synchronous>, transform_indices = @transform_5, window_bounds = array<i64: 8, 32, 10>}, {pipeline_mode = #tpu.pipeline_mode<synchronous>, transform_indices = @transform_6, window_bounds = array<i64: 1, 10>}, {pipeline_mode = #tpu.pipeline_mode<synchronous>, transform_indices = @transform_7, window_bounds = array<i64: 2, 10>}]} {
    %c0 = arith.constant 0 : index
    %c0_0 = arith.constant 0 : index
    %0 = vector.load %arg2[%c0, %c0_0] : memref<4x96xf32, #tpu.memory_space<vmem>>, vector<4x96xf32>
    %c0_1 = arith.constant 0 : index
    %c0_2 = arith.constant 0 : index
    %c0_3 = arith.constant 0 : index
    %1 = vector.load %arg3[%c0_1, %c0_2, %c0_3] : memref<1x32x96xf32, #tpu.memory_space<vmem>>, vector<1x32x96xf32>
    %2 = vector.shape_cast %1 : vector<1x32x96xf32> to vector<32x96xf32>
    %c0_4 = arith.constant 0 : index
    %c0_5 = arith.constant 0 : index
    %c0_6 = arith.constant 0 : index
    %3 = vector.load %arg4[%c0_4, %c0_5, %c0_6] : memref<2x32x96xf32, #tpu.memory_space<vmem>>, vector<1x32x96xf32>
    %4 = vector.shape_cast %3 : vector<1x32x96xf32> to vector<32x96xf32>
    %c1 = arith.constant 1 : index
    %c0_7 = arith.constant 0 : index
    %c0_8 = arith.constant 0 : index
    %5 = vector.load %arg4[%c1, %c0_7, %c0_8] : memref<2x32x96xf32, #tpu.memory_space<vmem>>, vector<1x32x96xf32>
    %6 = vector.shape_cast %5 : vector<1x32x96xf32> to vector<32x96xf32>
    %c0_9 = arith.constant 0 : index
    %c0_10 = arith.constant 0 : index
    %c0_11 = arith.constant 0 : index
    %7 = vector.load %arg5[%c0_9, %c0_10, %c0_11] : memref<2x2x96xf32, #tpu.memory_space<vmem>>, vector<1x2x96xf32>
    %8 = vector.shape_cast %7 : vector<1x2x96xf32> to vector<2x96xf32>
    %9 = vector.extract_strided_slice %8 {offsets = [0, 0], sizes = [1, 96], strides = [1, 1]} : vector<2x96xf32> to vector<1x96xf32>
    %10 = vector.extract_strided_slice %8 {offsets = [1, 0], sizes = [1, 96], strides = [1, 1]} : vector<2x96xf32> to vector<1x96xf32>
    %c1_12 = arith.constant 1 : index
    %c0_13 = arith.constant 0 : index
    %c0_14 = arith.constant 0 : index
    %11 = vector.load %arg5[%c1_12, %c0_13, %c0_14] : memref<2x2x96xf32, #tpu.memory_space<vmem>>, vector<1x2x96xf32>
    %12 = vector.shape_cast %11 : vector<1x2x96xf32> to vector<2x96xf32>
    %13 = vector.extract_strided_slice %12 {offsets = [0, 0], sizes = [1, 96], strides = [1, 1]} : vector<2x96xf32> to vector<1x96xf32>
    %14 = vector.extract_strided_slice %12 {offsets = [1, 0], sizes = [1, 96], strides = [1, 1]} : vector<2x96xf32> to vector<1x96xf32>
    %cst = arith.constant 0.000000e+00 : f32
    %15 = vector.broadcast %cst : f32 to vector<2x10xf32>
    %c0_15 = arith.constant 0 : index
    %c0_16 = arith.constant 0 : index
    %c0_17 = arith.constant 0 : index
    %16 = vector.load %arg1[%c0_15, %c0_16, %c0_17] : memref<8x2x4xf32, #tpu.memory_space<vmem>>, vector<1x2x4xf32>
    %17 = vector.shape_cast %16 : vector<1x2x4xf32> to vector<2x4xf32>
    %cst_18 = arith.constant dense<0.000000e+00> : vector<2x96xf32>
    %18 = tpu.matmul %17, %0, %cst_18 {dimension_numbers = #tpu.dot_dimension_numbers<[1], [0], [0], [1], [0, 0, 1, 1], [], []>} : vector<2x4xf32>, vector<4x96xf32>, vector<2x96xf32> -> vector<2x96xf32>
    %19 = vector.broadcast %9 : vector<1x96xf32> to vector<2x96xf32>
    %20 = arith.addf %18, %19 : vector<2x96xf32>
    %21 = vector.extract_strided_slice %20 {offsets = [0, 0], sizes = [2, 64], strides = [1, 1]} : vector<2x96xf32> to vector<2x64xf32>
    %22 = vector.extract_strided_slice %10 {offsets = [0, 0], sizes = [1, 64], strides = [1, 1]} : vector<1x96xf32> to vector<1x64xf32>
    %23 = vector.broadcast %22 : vector<1x64xf32> to vector<2x64xf32>
    %24 = arith.addf %21, %23 : vector<2x64xf32>
    %25 = arith.negf %24 : vector<2x64xf32>
    %26 = math.exp %25 : vector<2x64xf32>
    %cst_19 = arith.constant 1.000000e+00 : f32
    %27 = vector.broadcast %cst_19 : f32 to vector<2x64xf32>
    %28 = arith.addf %27, %26 : vector<2x64xf32>
    %29 = arith.divf %27, %28 : vector<2x64xf32>
    %30 = vector.extract_strided_slice %29 {offsets = [0, 0], sizes = [2, 32], strides = [1, 1]} : vector<2x64xf32> to vector<2x32xf32>
    %31 = vector.extract_strided_slice %29 {offsets = [0, 32], sizes = [2, 32], strides = [1, 1]} : vector<2x64xf32> to vector<2x32xf32>
    %32 = vector.extract_strided_slice %20 {offsets = [0, 64], sizes = [2, 32], strides = [1, 1]} : vector<2x96xf32> to vector<2x32xf32>
    %33 = vector.extract_strided_slice %10 {offsets = [0, 64], sizes = [1, 32], strides = [1, 1]} : vector<1x96xf32> to vector<1x32xf32>
    %34 = vector.broadcast %33 : vector<1x32xf32> to vector<2x32xf32>
    %35 = arith.mulf %30, %34 : vector<2x32xf32>
    %36 = arith.addf %32, %35 : vector<2x32xf32>
    %37 = math.tanh %36 : vector<2x32xf32>
    %cst_20 = arith.constant 1.000000e+00 : f32
    %38 = vector.broadcast %cst_20 : f32 to vector<2x32xf32>
    %39 = arith.subf %38, %31 : vector<2x32xf32>
    %40 = arith.mulf %39, %37 : vector<2x32xf32>
    %cst_21 = arith.constant dense<0.000000e+00> : vector<2x96xf32>
    %41 = tpu.matmul %40, %2, %cst_21 {dimension_numbers = #tpu.dot_dimension_numbers<[1], [0], [0], [1], [0, 0, 1, 1], [], []>} : vector<2x32xf32>, vector<32x96xf32>, vector<2x96xf32> -> vector<2x96xf32>
    %42 = vector.broadcast %13 : vector<1x96xf32> to vector<2x96xf32>
    %43 = arith.addf %41, %42 : vector<2x96xf32>
    %44 = vector.extract_strided_slice %43 {offsets = [0, 0], sizes = [2, 64], strides = [1, 1]} : vector<2x96xf32> to vector<2x64xf32>
    %45 = vector.extract_strided_slice %14 {offsets = [0, 0], sizes = [1, 64], strides = [1, 1]} : vector<1x96xf32> to vector<1x64xf32>
    %46 = vector.broadcast %45 : vector<1x64xf32> to vector<2x64xf32>
    %47 = arith.addf %44, %46 : vector<2x64xf32>
    %48 = arith.negf %47 : vector<2x64xf32>
    %49 = math.exp %48 : vector<2x64xf32>
    %cst_22 = arith.constant 1.000000e+00 : f32
    %50 = vector.broadcast %cst_22 : f32 to vector<2x64xf32>
    %51 = arith.addf %50, %49 : vector<2x64xf32>
    %52 = arith.divf %50, %51 : vector<2x64xf32>
    %53 = vector.extract_strided_slice %52 {offsets = [0, 0], sizes = [2, 32], strides = [1, 1]} : vector<2x64xf32> to vector<2x32xf32>
    %54 = vector.extract_strided_slice %52 {offsets = [0, 32], sizes = [2, 32], strides = [1, 1]} : vector<2x64xf32> to vector<2x32xf32>
    %55 = vector.extract_strided_slice %43 {offsets = [0, 64], sizes = [2, 32], strides = [1, 1]} : vector<2x96xf32> to vector<2x32xf32>
    %56 = vector.extract_strided_slice %14 {offsets = [0, 64], sizes = [1, 32], strides = [1, 1]} : vector<1x96xf32> to vector<1x32xf32>
    %57 = vector.broadcast %56 : vector<1x32xf32> to vector<2x32xf32>
    %58 = arith.mulf %53, %57 : vector<2x32xf32>
    %59 = arith.addf %55, %58 : vector<2x32xf32>
    %60 = math.tanh %59 : vector<2x32xf32>
    %cst_23 = arith.constant 1.000000e+00 : f32
    %61 = vector.broadcast %cst_23 : f32 to vector<2x32xf32>
    %62 = arith.subf %61, %54 : vector<2x32xf32>
    %63 = arith.mulf %62, %60 : vector<2x32xf32>
    %c0_24 = arith.constant 0 : index
    %c0_25 = arith.constant 0 : index
    %c0_26 = arith.constant 0 : index
    %64 = vector.load %arg6[%c0_24, %c0_25, %c0_26] : memref<8x32x10xf32, #tpu.memory_space<vmem>>, vector<1x32x10xf32>
    %65 = vector.shape_cast %64 : vector<1x32x10xf32> to vector<32x10xf32>
    %cst_27 = arith.constant dense<0.000000e+00> : vector<2x10xf32>
    %66 = tpu.matmul %63, %65, %cst_27 {dimension_numbers = #tpu.dot_dimension_numbers<[1], [0], [0], [1], [0, 0, 1, 1], [], []>} : vector<2x32xf32>, vector<32x10xf32>, vector<2x10xf32> -> vector<2x10xf32>
    %67 = arith.addf %15, %66 : vector<2x10xf32>
    %c1_28 = arith.constant 1 : index
    %c0_29 = arith.constant 0 : index
    %c0_30 = arith.constant 0 : index
    %68 = vector.load %arg1[%c1_28, %c0_29, %c0_30] : memref<8x2x4xf32, #tpu.memory_space<vmem>>, vector<1x2x4xf32>
    %69 = vector.shape_cast %68 : vector<1x2x4xf32> to vector<2x4xf32>
    %cst_31 = arith.constant dense<0.000000e+00> : vector<2x96xf32>
    %70 = tpu.matmul %69, %0, %cst_31 {dimension_numbers = #tpu.dot_dimension_numbers<[1], [0], [0], [1], [0, 0, 1, 1], [], []>} : vector<2x4xf32>, vector<4x96xf32>, vector<2x96xf32> -> vector<2x96xf32>
    %71 = vector.broadcast %9 : vector<1x96xf32> to vector<2x96xf32>
    %72 = arith.addf %70, %71 : vector<2x96xf32>
    %cst_32 = arith.constant dense<0.000000e+00> : vector<2x96xf32>
    %73 = tpu.matmul %40, %4, %cst_32 {dimension_numbers = #tpu.dot_dimension_numbers<[1], [0], [0], [1], [0, 0, 1, 1], [], []>} : vector<2x32xf32>, vector<32x96xf32>, vector<2x96xf32> -> vector<2x96xf32>
    %74 = vector.broadcast %10 : vector<1x96xf32> to vector<2x96xf32>
    %75 = arith.addf %73, %74 : vector<2x96xf32>
    %76 = vector.extract_strided_slice %72 {offsets = [0, 0], sizes = [2, 64], strides = [1, 1]} : vector<2x96xf32> to vector<2x64xf32>
    %77 = vector.extract_strided_slice %75 {offsets = [0, 0], sizes = [2, 64], strides = [1, 1]} : vector<2x96xf32> to vector<2x64xf32>
    %78 = arith.addf %76, %77 : vector<2x64xf32>
    %79 = arith.negf %78 : vector<2x64xf32>
    %80 = math.exp %79 : vector<2x64xf32>
    %cst_33 = arith.constant 1.000000e+00 : f32
    %81 = vector.broadcast %cst_33 : f32 to vector<2x64xf32>
    %82 = arith.addf %81, %80 : vector<2x64xf32>
    %83 = arith.divf %81, %82 : vector<2x64xf32>
    %84 = vector.extract_strided_slice %83 {offsets = [0, 0], sizes = [2, 32], strides = [1, 1]} : vector<2x64xf32> to vector<2x32xf32>
    %85 = vector.extract_strided_slice %83 {offsets = [0, 32], sizes = [2, 32], strides = [1, 1]} : vector<2x64xf32> to vector<2x32xf32>
    %86 = vector.extract_strided_slice %72 {offsets = [0, 64], sizes = [2, 32], strides = [1, 1]} : vector<2x96xf32> to vector<2x32xf32>
    %87 = vector.extract_strided_slice %75 {offsets = [0, 64], sizes = [2, 32], strides = [1, 1]} : vector<2x96xf32> to vector<2x32xf32>
    %88 = arith.mulf %84, %87 : vector<2x32xf32>
    %89 = arith.addf %86, %88 : vector<2x32xf32>
    %90 = math.tanh %89 : vector<2x32xf32>
    %cst_34 = arith.constant 1.000000e+00 : f32
    %91 = vector.broadcast %cst_34 : f32 to vector<2x32xf32>
    %92 = arith.subf %91, %85 : vector<2x32xf32>
    %93 = arith.mulf %92, %90 : vector<2x32xf32>
    %94 = arith.mulf %85, %40 : vector<2x32xf32>
    %95 = arith.addf %93, %94 : vector<2x32xf32>
    %cst_35 = arith.constant dense<0.000000e+00> : vector<2x96xf32>
    %96 = tpu.matmul %95, %2, %cst_35 {dimension_numbers = #tpu.dot_dimension_numbers<[1], [0], [0], [1], [0, 0, 1, 1], [], []>} : vector<2x32xf32>, vector<32x96xf32>, vector<2x96xf32> -> vector<2x96xf32>
    %97 = vector.broadcast %13 : vector<1x96xf32> to vector<2x96xf32>
    %98 = arith.addf %96, %97 : vector<2x96xf32>
    %cst_36 = arith.constant dense<0.000000e+00> : vector<2x96xf32>
    %99 = tpu.matmul %63, %6, %cst_36 {dimension_numbers = #tpu.dot_dimension_numbers<[1], [0], [0], [1], [0, 0, 1, 1], [], []>} : vector<2x32xf32>, vector<32x96xf32>, vector<2x96xf32> -> vector<2x96xf32>
    %100 = vector.broadcast %14 : vector<1x96xf32> to vector<2x96xf32>
    %101 = arith.addf %99, %100 : vector<2x96xf32>
    %102 = vector.extract_strided_slice %98 {offsets = [0, 0], sizes = [2, 64], strides = [1, 1]} : vector<2x96xf32> to vector<2x64xf32>
    %103 = vector.extract_strided_slice %101 {offsets = [0, 0], sizes = [2, 64], strides = [1, 1]} : vector<2x96xf32> to vector<2x64xf32>
    %104 = arith.addf %102, %103 : vector<2x64xf32>
    %105 = arith.negf %104 : vector<2x64xf32>
    %106 = math.exp %105 : vector<2x64xf32>
    %cst_37 = arith.constant 1.000000e+00 : f32
    %107 = vector.broadcast %cst_37 : f32 to vector<2x64xf32>
    %108 = arith.addf %107, %106 : vector<2x64xf32>
    %109 = arith.divf %107, %108 : vector<2x64xf32>
    %110 = vector.extract_strided_slice %109 {offsets = [0, 0], sizes = [2, 32], strides = [1, 1]} : vector<2x64xf32> to vector<2x32xf32>
    %111 = vector.extract_strided_slice %109 {offsets = [0, 32], sizes = [2, 32], strides = [1, 1]} : vector<2x64xf32> to vector<2x32xf32>
    %112 = vector.extract_strided_slice %98 {offsets = [0, 64], sizes = [2, 32], strides = [1, 1]} : vector<2x96xf32> to vector<2x32xf32>
    %113 = vector.extract_strided_slice %101 {offsets = [0, 64], sizes = [2, 32], strides = [1, 1]} : vector<2x96xf32> to vector<2x32xf32>
    %114 = arith.mulf %110, %113 : vector<2x32xf32>
    %115 = arith.addf %112, %114 : vector<2x32xf32>
    %116 = math.tanh %115 : vector<2x32xf32>
    %cst_38 = arith.constant 1.000000e+00 : f32
    %117 = vector.broadcast %cst_38 : f32 to vector<2x32xf32>
    %118 = arith.subf %117, %111 : vector<2x32xf32>
    %119 = arith.mulf %118, %116 : vector<2x32xf32>
    %120 = arith.mulf %111, %63 : vector<2x32xf32>
    %121 = arith.addf %119, %120 : vector<2x32xf32>
    %c1_39 = arith.constant 1 : index
    %c0_40 = arith.constant 0 : index
    %c0_41 = arith.constant 0 : index
    %122 = vector.load %arg6[%c1_39, %c0_40, %c0_41] : memref<8x32x10xf32, #tpu.memory_space<vmem>>, vector<1x32x10xf32>
    %123 = vector.shape_cast %122 : vector<1x32x10xf32> to vector<32x10xf32>
    %cst_42 = arith.constant dense<0.000000e+00> : vector<2x10xf32>
    %124 = tpu.matmul %121, %123, %cst_42 {dimension_numbers = #tpu.dot_dimension_numbers<[1], [0], [0], [1], [0, 0, 1, 1], [], []>} : vector<2x32xf32>, vector<32x10xf32>, vector<2x10xf32> -> vector<2x10xf32>
    %125 = arith.addf %67, %124 : vector<2x10xf32>
    %c2 = arith.constant 2 : index
    %c0_43 = arith.constant 0 : index
    %c0_44 = arith.constant 0 : index
    %126 = vector.load %arg1[%c2, %c0_43, %c0_44] : memref<8x2x4xf32, #tpu.memory_space<vmem>>, vector<1x2x4xf32>
    %127 = vector.shape_cast %126 : vector<1x2x4xf32> to vector<2x4xf32>
    %cst_45 = arith.constant dense<0.000000e+00> : vector<2x96xf32>
    %128 = tpu.matmul %127, %0, %cst_45 {dimension_numbers = #tpu.dot_dimension_numbers<[1], [0], [0], [1], [0, 0, 1, 1], [], []>} : vector<2x4xf32>, vector<4x96xf32>, vector<2x96xf32> -> vector<2x96xf32>
    %129 = vector.broadcast %9 : vector<1x96xf32> to vector<2x96xf32>
    %130 = arith.addf %128, %129 : vector<2x96xf32>
    %cst_46 = arith.constant dense<0.000000e+00> : vector<2x96xf32>
    %131 = tpu.matmul %95, %4, %cst_46 {dimension_numbers = #tpu.dot_dimension_numbers<[1], [0], [0], [1], [0, 0, 1, 1], [], []>} : vector<2x32xf32>, vector<32x96xf32>, vector<2x96xf32> -> vector<2x96xf32>
    %132 = vector.broadcast %10 : vector<1x96xf32> to vector<2x96xf32>
    %133 = arith.addf %131, %132 : vector<2x96xf32>
    %134 = vector.extract_strided_slice %130 {offsets = [0, 0], sizes = [2, 64], strides = [1, 1]} : vector<2x96xf32> to vector<2x64xf32>
    %135 = vector.extract_strided_slice %133 {offsets = [0, 0], sizes = [2, 64], strides = [1, 1]} : vector<2x96xf32> to vector<2x64xf32>
    %136 = arith.addf %134, %135 : vector<2x64xf32>
    %137 = arith.negf %136 : vector<2x64xf32>
    %138 = math.exp %137 : vector<2x64xf32>
    %cst_47 = arith.constant 1.000000e+00 : f32
    %139 = vector.broadcast %cst_47 : f32 to vector<2x64xf32>
    %140 = arith.addf %139, %138 : vector<2x64xf32>
    %141 = arith.divf %139, %140 : vector<2x64xf32>
    %142 = vector.extract_strided_slice %141 {offsets = [0, 0], sizes = [2, 32], strides = [1, 1]} : vector<2x64xf32> to vector<2x32xf32>
    %143 = vector.extract_strided_slice %141 {offsets = [0, 32], sizes = [2, 32], strides = [1, 1]} : vector<2x64xf32> to vector<2x32xf32>
    %144 = vector.extract_strided_slice %130 {offsets = [0, 64], sizes = [2, 32], strides = [1, 1]} : vector<2x96xf32> to vector<2x32xf32>
    %145 = vector.extract_strided_slice %133 {offsets = [0, 64], sizes = [2, 32], strides = [1, 1]} : vector<2x96xf32> to vector<2x32xf32>
    %146 = arith.mulf %142, %145 : vector<2x32xf32>
    %147 = arith.addf %144, %146 : vector<2x32xf32>
    %148 = math.tanh %147 : vector<2x32xf32>
    %cst_48 = arith.constant 1.000000e+00 : f32
    %149 = vector.broadcast %cst_48 : f32 to vector<2x32xf32>
    %150 = arith.subf %149, %143 : vector<2x32xf32>
    %151 = arith.mulf %150, %148 : vector<2x32xf32>
    %152 = arith.mulf %143, %95 : vector<2x32xf32>
    %153 = arith.addf %151, %152 : vector<2x32xf32>
    %cst_49 = arith.constant dense<0.000000e+00> : vector<2x96xf32>
    %154 = tpu.matmul %153, %2, %cst_49 {dimension_numbers = #tpu.dot_dimension_numbers<[1], [0], [0], [1], [0, 0, 1, 1], [], []>} : vector<2x32xf32>, vector<32x96xf32>, vector<2x96xf32> -> vector<2x96xf32>
    %155 = vector.broadcast %13 : vector<1x96xf32> to vector<2x96xf32>
    %156 = arith.addf %154, %155 : vector<2x96xf32>
    %cst_50 = arith.constant dense<0.000000e+00> : vector<2x96xf32>
    %157 = tpu.matmul %121, %6, %cst_50 {dimension_numbers = #tpu.dot_dimension_numbers<[1], [0], [0], [1], [0, 0, 1, 1], [], []>} : vector<2x32xf32>, vector<32x96xf32>, vector<2x96xf32> -> vector<2x96xf32>
    %158 = vector.broadcast %14 : vector<1x96xf32> to vector<2x96xf32>
    %159 = arith.addf %157, %158 : vector<2x96xf32>
    %160 = vector.extract_strided_slice %156 {offsets = [0, 0], sizes = [2, 64], strides = [1, 1]} : vector<2x96xf32> to vector<2x64xf32>
    %161 = vector.extract_strided_slice %159 {offsets = [0, 0], sizes = [2, 64], strides = [1, 1]} : vector<2x96xf32> to vector<2x64xf32>
    %162 = arith.addf %160, %161 : vector<2x64xf32>
    %163 = arith.negf %162 : vector<2x64xf32>
    %164 = math.exp %163 : vector<2x64xf32>
    %cst_51 = arith.constant 1.000000e+00 : f32
    %165 = vector.broadcast %cst_51 : f32 to vector<2x64xf32>
    %166 = arith.addf %165, %164 : vector<2x64xf32>
    %167 = arith.divf %165, %166 : vector<2x64xf32>
    %168 = vector.extract_strided_slice %167 {offsets = [0, 0], sizes = [2, 32], strides = [1, 1]} : vector<2x64xf32> to vector<2x32xf32>
    %169 = vector.extract_strided_slice %167 {offsets = [0, 32], sizes = [2, 32], strides = [1, 1]} : vector<2x64xf32> to vector<2x32xf32>
    %170 = vector.extract_strided_slice %156 {offsets = [0, 64], sizes = [2, 32], strides = [1, 1]} : vector<2x96xf32> to vector<2x32xf32>
    %171 = vector.extract_strided_slice %159 {offsets = [0, 64], sizes = [2, 32], strides = [1, 1]} : vector<2x96xf32> to vector<2x32xf32>
    %172 = arith.mulf %168, %171 : vector<2x32xf32>
    %173 = arith.addf %170, %172 : vector<2x32xf32>
    %174 = math.tanh %173 : vector<2x32xf32>
    %cst_52 = arith.constant 1.000000e+00 : f32
    %175 = vector.broadcast %cst_52 : f32 to vector<2x32xf32>
    %176 = arith.subf %175, %169 : vector<2x32xf32>
    %177 = arith.mulf %176, %174 : vector<2x32xf32>
    %178 = arith.mulf %169, %121 : vector<2x32xf32>
    %179 = arith.addf %177, %178 : vector<2x32xf32>
    %c2_53 = arith.constant 2 : index
    %c0_54 = arith.constant 0 : index
    %c0_55 = arith.constant 0 : index
    %180 = vector.load %arg6[%c2_53, %c0_54, %c0_55] : memref<8x32x10xf32, #tpu.memory_space<vmem>>, vector<1x32x10xf32>
    %181 = vector.shape_cast %180 : vector<1x32x10xf32> to vector<32x10xf32>
    %cst_56 = arith.constant dense<0.000000e+00> : vector<2x10xf32>
    %182 = tpu.matmul %179, %181, %cst_56 {dimension_numbers = #tpu.dot_dimension_numbers<[1], [0], [0], [1], [0, 0, 1, 1], [], []>} : vector<2x32xf32>, vector<32x10xf32>, vector<2x10xf32> -> vector<2x10xf32>
    %183 = arith.addf %125, %182 : vector<2x10xf32>
    %c3 = arith.constant 3 : index
    %c0_57 = arith.constant 0 : index
    %c0_58 = arith.constant 0 : index
    %184 = vector.load %arg1[%c3, %c0_57, %c0_58] : memref<8x2x4xf32, #tpu.memory_space<vmem>>, vector<1x2x4xf32>
    %185 = vector.shape_cast %184 : vector<1x2x4xf32> to vector<2x4xf32>
    %cst_59 = arith.constant dense<0.000000e+00> : vector<2x96xf32>
    %186 = tpu.matmul %185, %0, %cst_59 {dimension_numbers = #tpu.dot_dimension_numbers<[1], [0], [0], [1], [0, 0, 1, 1], [], []>} : vector<2x4xf32>, vector<4x96xf32>, vector<2x96xf32> -> vector<2x96xf32>
    %187 = vector.broadcast %9 : vector<1x96xf32> to vector<2x96xf32>
    %188 = arith.addf %186, %187 : vector<2x96xf32>
    %cst_60 = arith.constant dense<0.000000e+00> : vector<2x96xf32>
    %189 = tpu.matmul %153, %4, %cst_60 {dimension_numbers = #tpu.dot_dimension_numbers<[1], [0], [0], [1], [0, 0, 1, 1], [], []>} : vector<2x32xf32>, vector<32x96xf32>, vector<2x96xf32> -> vector<2x96xf32>
    %190 = vector.broadcast %10 : vector<1x96xf32> to vector<2x96xf32>
    %191 = arith.addf %189, %190 : vector<2x96xf32>
    %192 = vector.extract_strided_slice %188 {offsets = [0, 0], sizes = [2, 64], strides = [1, 1]} : vector<2x96xf32> to vector<2x64xf32>
    %193 = vector.extract_strided_slice %191 {offsets = [0, 0], sizes = [2, 64], strides = [1, 1]} : vector<2x96xf32> to vector<2x64xf32>
    %194 = arith.addf %192, %193 : vector<2x64xf32>
    %195 = arith.negf %194 : vector<2x64xf32>
    %196 = math.exp %195 : vector<2x64xf32>
    %cst_61 = arith.constant 1.000000e+00 : f32
    %197 = vector.broadcast %cst_61 : f32 to vector<2x64xf32>
    %198 = arith.addf %197, %196 : vector<2x64xf32>
    %199 = arith.divf %197, %198 : vector<2x64xf32>
    %200 = vector.extract_strided_slice %199 {offsets = [0, 0], sizes = [2, 32], strides = [1, 1]} : vector<2x64xf32> to vector<2x32xf32>
    %201 = vector.extract_strided_slice %199 {offsets = [0, 32], sizes = [2, 32], strides = [1, 1]} : vector<2x64xf32> to vector<2x32xf32>
    %202 = vector.extract_strided_slice %188 {offsets = [0, 64], sizes = [2, 32], strides = [1, 1]} : vector<2x96xf32> to vector<2x32xf32>
    %203 = vector.extract_strided_slice %191 {offsets = [0, 64], sizes = [2, 32], strides = [1, 1]} : vector<2x96xf32> to vector<2x32xf32>
    %204 = arith.mulf %200, %203 : vector<2x32xf32>
    %205 = arith.addf %202, %204 : vector<2x32xf32>
    %206 = math.tanh %205 : vector<2x32xf32>
    %cst_62 = arith.constant 1.000000e+00 : f32
    %207 = vector.broadcast %cst_62 : f32 to vector<2x32xf32>
    %208 = arith.subf %207, %201 : vector<2x32xf32>
    %209 = arith.mulf %208, %206 : vector<2x32xf32>
    %210 = arith.mulf %201, %153 : vector<2x32xf32>
    %211 = arith.addf %209, %210 : vector<2x32xf32>
    %cst_63 = arith.constant dense<0.000000e+00> : vector<2x96xf32>
    %212 = tpu.matmul %211, %2, %cst_63 {dimension_numbers = #tpu.dot_dimension_numbers<[1], [0], [0], [1], [0, 0, 1, 1], [], []>} : vector<2x32xf32>, vector<32x96xf32>, vector<2x96xf32> -> vector<2x96xf32>
    %213 = vector.broadcast %13 : vector<1x96xf32> to vector<2x96xf32>
    %214 = arith.addf %212, %213 : vector<2x96xf32>
    %cst_64 = arith.constant dense<0.000000e+00> : vector<2x96xf32>
    %215 = tpu.matmul %179, %6, %cst_64 {dimension_numbers = #tpu.dot_dimension_numbers<[1], [0], [0], [1], [0, 0, 1, 1], [], []>} : vector<2x32xf32>, vector<32x96xf32>, vector<2x96xf32> -> vector<2x96xf32>
    %216 = vector.broadcast %14 : vector<1x96xf32> to vector<2x96xf32>
    %217 = arith.addf %215, %216 : vector<2x96xf32>
    %218 = vector.extract_strided_slice %214 {offsets = [0, 0], sizes = [2, 64], strides = [1, 1]} : vector<2x96xf32> to vector<2x64xf32>
    %219 = vector.extract_strided_slice %217 {offsets = [0, 0], sizes = [2, 64], strides = [1, 1]} : vector<2x96xf32> to vector<2x64xf32>
    %220 = arith.addf %218, %219 : vector<2x64xf32>
    %221 = arith.negf %220 : vector<2x64xf32>
    %222 = math.exp %221 : vector<2x64xf32>
    %cst_65 = arith.constant 1.000000e+00 : f32
    %223 = vector.broadcast %cst_65 : f32 to vector<2x64xf32>
    %224 = arith.addf %223, %222 : vector<2x64xf32>
    %225 = arith.divf %223, %224 : vector<2x64xf32>
    %226 = vector.extract_strided_slice %225 {offsets = [0, 0], sizes = [2, 32], strides = [1, 1]} : vector<2x64xf32> to vector<2x32xf32>
    %227 = vector.extract_strided_slice %225 {offsets = [0, 32], sizes = [2, 32], strides = [1, 1]} : vector<2x64xf32> to vector<2x32xf32>
    %228 = vector.extract_strided_slice %214 {offsets = [0, 64], sizes = [2, 32], strides = [1, 1]} : vector<2x96xf32> to vector<2x32xf32>
    %229 = vector.extract_strided_slice %217 {offsets = [0, 64], sizes = [2, 32], strides = [1, 1]} : vector<2x96xf32> to vector<2x32xf32>
    %230 = arith.mulf %226, %229 : vector<2x32xf32>
    %231 = arith.addf %228, %230 : vector<2x32xf32>
    %232 = math.tanh %231 : vector<2x32xf32>
    %cst_66 = arith.constant 1.000000e+00 : f32
    %233 = vector.broadcast %cst_66 : f32 to vector<2x32xf32>
    %234 = arith.subf %233, %227 : vector<2x32xf32>
    %235 = arith.mulf %234, %232 : vector<2x32xf32>
    %236 = arith.mulf %227, %179 : vector<2x32xf32>
    %237 = arith.addf %235, %236 : vector<2x32xf32>
    %c3_67 = arith.constant 3 : index
    %c0_68 = arith.constant 0 : index
    %c0_69 = arith.constant 0 : index
    %238 = vector.load %arg6[%c3_67, %c0_68, %c0_69] : memref<8x32x10xf32, #tpu.memory_space<vmem>>, vector<1x32x10xf32>
    %239 = vector.shape_cast %238 : vector<1x32x10xf32> to vector<32x10xf32>
    %cst_70 = arith.constant dense<0.000000e+00> : vector<2x10xf32>
    %240 = tpu.matmul %237, %239, %cst_70 {dimension_numbers = #tpu.dot_dimension_numbers<[1], [0], [0], [1], [0, 0, 1, 1], [], []>} : vector<2x32xf32>, vector<32x10xf32>, vector<2x10xf32> -> vector<2x10xf32>
    %241 = arith.addf %183, %240 : vector<2x10xf32>
    %c4 = arith.constant 4 : index
    %c0_71 = arith.constant 0 : index
    %c0_72 = arith.constant 0 : index
    %242 = vector.load %arg1[%c4, %c0_71, %c0_72] : memref<8x2x4xf32, #tpu.memory_space<vmem>>, vector<1x2x4xf32>
    %243 = vector.shape_cast %242 : vector<1x2x4xf32> to vector<2x4xf32>
    %cst_73 = arith.constant dense<0.000000e+00> : vector<2x96xf32>
    %244 = tpu.matmul %243, %0, %cst_73 {dimension_numbers = #tpu.dot_dimension_numbers<[1], [0], [0], [1], [0, 0, 1, 1], [], []>} : vector<2x4xf32>, vector<4x96xf32>, vector<2x96xf32> -> vector<2x96xf32>
    %245 = vector.broadcast %9 : vector<1x96xf32> to vector<2x96xf32>
    %246 = arith.addf %244, %245 : vector<2x96xf32>
    %cst_74 = arith.constant dense<0.000000e+00> : vector<2x96xf32>
    %247 = tpu.matmul %211, %4, %cst_74 {dimension_numbers = #tpu.dot_dimension_numbers<[1], [0], [0], [1], [0, 0, 1, 1], [], []>} : vector<2x32xf32>, vector<32x96xf32>, vector<2x96xf32> -> vector<2x96xf32>
    %248 = vector.broadcast %10 : vector<1x96xf32> to vector<2x96xf32>
    %249 = arith.addf %247, %248 : vector<2x96xf32>
    %250 = vector.extract_strided_slice %246 {offsets = [0, 0], sizes = [2, 64], strides = [1, 1]} : vector<2x96xf32> to vector<2x64xf32>
    %251 = vector.extract_strided_slice %249 {offsets = [0, 0], sizes = [2, 64], strides = [1, 1]} : vector<2x96xf32> to vector<2x64xf32>
    %252 = arith.addf %250, %251 : vector<2x64xf32>
    %253 = arith.negf %252 : vector<2x64xf32>
    %254 = math.exp %253 : vector<2x64xf32>
    %cst_75 = arith.constant 1.000000e+00 : f32
    %255 = vector.broadcast %cst_75 : f32 to vector<2x64xf32>
    %256 = arith.addf %255, %254 : vector<2x64xf32>
    %257 = arith.divf %255, %256 : vector<2x64xf32>
    %258 = vector.extract_strided_slice %257 {offsets = [0, 0], sizes = [2, 32], strides = [1, 1]} : vector<2x64xf32> to vector<2x32xf32>
    %259 = vector.extract_strided_slice %257 {offsets = [0, 32], sizes = [2, 32], strides = [1, 1]} : vector<2x64xf32> to vector<2x32xf32>
    %260 = vector.extract_strided_slice %246 {offsets = [0, 64], sizes = [2, 32], strides = [1, 1]} : vector<2x96xf32> to vector<2x32xf32>
    %261 = vector.extract_strided_slice %249 {offsets = [0, 64], sizes = [2, 32], strides = [1, 1]} : vector<2x96xf32> to vector<2x32xf32>
    %262 = arith.mulf %258, %261 : vector<2x32xf32>
    %263 = arith.addf %260, %262 : vector<2x32xf32>
    %264 = math.tanh %263 : vector<2x32xf32>
    %cst_76 = arith.constant 1.000000e+00 : f32
    %265 = vector.broadcast %cst_76 : f32 to vector<2x32xf32>
    %266 = arith.subf %265, %259 : vector<2x32xf32>
    %267 = arith.mulf %266, %264 : vector<2x32xf32>
    %268 = arith.mulf %259, %211 : vector<2x32xf32>
    %269 = arith.addf %267, %268 : vector<2x32xf32>
    %cst_77 = arith.constant dense<0.000000e+00> : vector<2x96xf32>
    %270 = tpu.matmul %269, %2, %cst_77 {dimension_numbers = #tpu.dot_dimension_numbers<[1], [0], [0], [1], [0, 0, 1, 1], [], []>} : vector<2x32xf32>, vector<32x96xf32>, vector<2x96xf32> -> vector<2x96xf32>
    %271 = vector.broadcast %13 : vector<1x96xf32> to vector<2x96xf32>
    %272 = arith.addf %270, %271 : vector<2x96xf32>
    %cst_78 = arith.constant dense<0.000000e+00> : vector<2x96xf32>
    %273 = tpu.matmul %237, %6, %cst_78 {dimension_numbers = #tpu.dot_dimension_numbers<[1], [0], [0], [1], [0, 0, 1, 1], [], []>} : vector<2x32xf32>, vector<32x96xf32>, vector<2x96xf32> -> vector<2x96xf32>
    %274 = vector.broadcast %14 : vector<1x96xf32> to vector<2x96xf32>
    %275 = arith.addf %273, %274 : vector<2x96xf32>
    %276 = vector.extract_strided_slice %272 {offsets = [0, 0], sizes = [2, 64], strides = [1, 1]} : vector<2x96xf32> to vector<2x64xf32>
    %277 = vector.extract_strided_slice %275 {offsets = [0, 0], sizes = [2, 64], strides = [1, 1]} : vector<2x96xf32> to vector<2x64xf32>
    %278 = arith.addf %276, %277 : vector<2x64xf32>
    %279 = arith.negf %278 : vector<2x64xf32>
    %280 = math.exp %279 : vector<2x64xf32>
    %cst_79 = arith.constant 1.000000e+00 : f32
    %281 = vector.broadcast %cst_79 : f32 to vector<2x64xf32>
    %282 = arith.addf %281, %280 : vector<2x64xf32>
    %283 = arith.divf %281, %282 : vector<2x64xf32>
    %284 = vector.extract_strided_slice %283 {offsets = [0, 0], sizes = [2, 32], strides = [1, 1]} : vector<2x64xf32> to vector<2x32xf32>
    %285 = vector.extract_strided_slice %283 {offsets = [0, 32], sizes = [2, 32], strides = [1, 1]} : vector<2x64xf32> to vector<2x32xf32>
    %286 = vector.extract_strided_slice %272 {offsets = [0, 64], sizes = [2, 32], strides = [1, 1]} : vector<2x96xf32> to vector<2x32xf32>
    %287 = vector.extract_strided_slice %275 {offsets = [0, 64], sizes = [2, 32], strides = [1, 1]} : vector<2x96xf32> to vector<2x32xf32>
    %288 = arith.mulf %284, %287 : vector<2x32xf32>
    %289 = arith.addf %286, %288 : vector<2x32xf32>
    %290 = math.tanh %289 : vector<2x32xf32>
    %cst_80 = arith.constant 1.000000e+00 : f32
    %291 = vector.broadcast %cst_80 : f32 to vector<2x32xf32>
    %292 = arith.subf %291, %285 : vector<2x32xf32>
    %293 = arith.mulf %292, %290 : vector<2x32xf32>
    %294 = arith.mulf %285, %237 : vector<2x32xf32>
    %295 = arith.addf %293, %294 : vector<2x32xf32>
    %c4_81 = arith.constant 4 : index
    %c0_82 = arith.constant 0 : index
    %c0_83 = arith.constant 0 : index
    %296 = vector.load %arg6[%c4_81, %c0_82, %c0_83] : memref<8x32x10xf32, #tpu.memory_space<vmem>>, vector<1x32x10xf32>
    %297 = vector.shape_cast %296 : vector<1x32x10xf32> to vector<32x10xf32>
    %cst_84 = arith.constant dense<0.000000e+00> : vector<2x10xf32>
    %298 = tpu.matmul %295, %297, %cst_84 {dimension_numbers = #tpu.dot_dimension_numbers<[1], [0], [0], [1], [0, 0, 1, 1], [], []>} : vector<2x32xf32>, vector<32x10xf32>, vector<2x10xf32> -> vector<2x10xf32>
    %299 = arith.addf %241, %298 : vector<2x10xf32>
    %c5 = arith.constant 5 : index
    %c0_85 = arith.constant 0 : index
    %c0_86 = arith.constant 0 : index
    %300 = vector.load %arg1[%c5, %c0_85, %c0_86] : memref<8x2x4xf32, #tpu.memory_space<vmem>>, vector<1x2x4xf32>
    %301 = vector.shape_cast %300 : vector<1x2x4xf32> to vector<2x4xf32>
    %cst_87 = arith.constant dense<0.000000e+00> : vector<2x96xf32>
    %302 = tpu.matmul %301, %0, %cst_87 {dimension_numbers = #tpu.dot_dimension_numbers<[1], [0], [0], [1], [0, 0, 1, 1], [], []>} : vector<2x4xf32>, vector<4x96xf32>, vector<2x96xf32> -> vector<2x96xf32>
    %303 = vector.broadcast %9 : vector<1x96xf32> to vector<2x96xf32>
    %304 = arith.addf %302, %303 : vector<2x96xf32>
    %cst_88 = arith.constant dense<0.000000e+00> : vector<2x96xf32>
    %305 = tpu.matmul %269, %4, %cst_88 {dimension_numbers = #tpu.dot_dimension_numbers<[1], [0], [0], [1], [0, 0, 1, 1], [], []>} : vector<2x32xf32>, vector<32x96xf32>, vector<2x96xf32> -> vector<2x96xf32>
    %306 = vector.broadcast %10 : vector<1x96xf32> to vector<2x96xf32>
    %307 = arith.addf %305, %306 : vector<2x96xf32>
    %308 = vector.extract_strided_slice %304 {offsets = [0, 0], sizes = [2, 64], strides = [1, 1]} : vector<2x96xf32> to vector<2x64xf32>
    %309 = vector.extract_strided_slice %307 {offsets = [0, 0], sizes = [2, 64], strides = [1, 1]} : vector<2x96xf32> to vector<2x64xf32>
    %310 = arith.addf %308, %309 : vector<2x64xf32>
    %311 = arith.negf %310 : vector<2x64xf32>
    %312 = math.exp %311 : vector<2x64xf32>
    %cst_89 = arith.constant 1.000000e+00 : f32
    %313 = vector.broadcast %cst_89 : f32 to vector<2x64xf32>
    %314 = arith.addf %313, %312 : vector<2x64xf32>
    %315 = arith.divf %313, %314 : vector<2x64xf32>
    %316 = vector.extract_strided_slice %315 {offsets = [0, 0], sizes = [2, 32], strides = [1, 1]} : vector<2x64xf32> to vector<2x32xf32>
    %317 = vector.extract_strided_slice %315 {offsets = [0, 32], sizes = [2, 32], strides = [1, 1]} : vector<2x64xf32> to vector<2x32xf32>
    %318 = vector.extract_strided_slice %304 {offsets = [0, 64], sizes = [2, 32], strides = [1, 1]} : vector<2x96xf32> to vector<2x32xf32>
    %319 = vector.extract_strided_slice %307 {offsets = [0, 64], sizes = [2, 32], strides = [1, 1]} : vector<2x96xf32> to vector<2x32xf32>
    %320 = arith.mulf %316, %319 : vector<2x32xf32>
    %321 = arith.addf %318, %320 : vector<2x32xf32>
    %322 = math.tanh %321 : vector<2x32xf32>
    %cst_90 = arith.constant 1.000000e+00 : f32
    %323 = vector.broadcast %cst_90 : f32 to vector<2x32xf32>
    %324 = arith.subf %323, %317 : vector<2x32xf32>
    %325 = arith.mulf %324, %322 : vector<2x32xf32>
    %326 = arith.mulf %317, %269 : vector<2x32xf32>
    %327 = arith.addf %325, %326 : vector<2x32xf32>
    %cst_91 = arith.constant dense<0.000000e+00> : vector<2x96xf32>
    %328 = tpu.matmul %327, %2, %cst_91 {dimension_numbers = #tpu.dot_dimension_numbers<[1], [0], [0], [1], [0, 0, 1, 1], [], []>} : vector<2x32xf32>, vector<32x96xf32>, vector<2x96xf32> -> vector<2x96xf32>
    %329 = vector.broadcast %13 : vector<1x96xf32> to vector<2x96xf32>
    %330 = arith.addf %328, %329 : vector<2x96xf32>
    %cst_92 = arith.constant dense<0.000000e+00> : vector<2x96xf32>
    %331 = tpu.matmul %295, %6, %cst_92 {dimension_numbers = #tpu.dot_dimension_numbers<[1], [0], [0], [1], [0, 0, 1, 1], [], []>} : vector<2x32xf32>, vector<32x96xf32>, vector<2x96xf32> -> vector<2x96xf32>
    %332 = vector.broadcast %14 : vector<1x96xf32> to vector<2x96xf32>
    %333 = arith.addf %331, %332 : vector<2x96xf32>
    %334 = vector.extract_strided_slice %330 {offsets = [0, 0], sizes = [2, 64], strides = [1, 1]} : vector<2x96xf32> to vector<2x64xf32>
    %335 = vector.extract_strided_slice %333 {offsets = [0, 0], sizes = [2, 64], strides = [1, 1]} : vector<2x96xf32> to vector<2x64xf32>
    %336 = arith.addf %334, %335 : vector<2x64xf32>
    %337 = arith.negf %336 : vector<2x64xf32>
    %338 = math.exp %337 : vector<2x64xf32>
    %cst_93 = arith.constant 1.000000e+00 : f32
    %339 = vector.broadcast %cst_93 : f32 to vector<2x64xf32>
    %340 = arith.addf %339, %338 : vector<2x64xf32>
    %341 = arith.divf %339, %340 : vector<2x64xf32>
    %342 = vector.extract_strided_slice %341 {offsets = [0, 0], sizes = [2, 32], strides = [1, 1]} : vector<2x64xf32> to vector<2x32xf32>
    %343 = vector.extract_strided_slice %341 {offsets = [0, 32], sizes = [2, 32], strides = [1, 1]} : vector<2x64xf32> to vector<2x32xf32>
    %344 = vector.extract_strided_slice %330 {offsets = [0, 64], sizes = [2, 32], strides = [1, 1]} : vector<2x96xf32> to vector<2x32xf32>
    %345 = vector.extract_strided_slice %333 {offsets = [0, 64], sizes = [2, 32], strides = [1, 1]} : vector<2x96xf32> to vector<2x32xf32>
    %346 = arith.mulf %342, %345 : vector<2x32xf32>
    %347 = arith.addf %344, %346 : vector<2x32xf32>
    %348 = math.tanh %347 : vector<2x32xf32>
    %cst_94 = arith.constant 1.000000e+00 : f32
    %349 = vector.broadcast %cst_94 : f32 to vector<2x32xf32>
    %350 = arith.subf %349, %343 : vector<2x32xf32>
    %351 = arith.mulf %350, %348 : vector<2x32xf32>
    %352 = arith.mulf %343, %295 : vector<2x32xf32>
    %353 = arith.addf %351, %352 : vector<2x32xf32>
    %c5_95 = arith.constant 5 : index
    %c0_96 = arith.constant 0 : index
    %c0_97 = arith.constant 0 : index
    %354 = vector.load %arg6[%c5_95, %c0_96, %c0_97] : memref<8x32x10xf32, #tpu.memory_space<vmem>>, vector<1x32x10xf32>
    %355 = vector.shape_cast %354 : vector<1x32x10xf32> to vector<32x10xf32>
    %cst_98 = arith.constant dense<0.000000e+00> : vector<2x10xf32>
    %356 = tpu.matmul %353, %355, %cst_98 {dimension_numbers = #tpu.dot_dimension_numbers<[1], [0], [0], [1], [0, 0, 1, 1], [], []>} : vector<2x32xf32>, vector<32x10xf32>, vector<2x10xf32> -> vector<2x10xf32>
    %357 = arith.addf %299, %356 : vector<2x10xf32>
    %c6 = arith.constant 6 : index
    %c0_99 = arith.constant 0 : index
    %c0_100 = arith.constant 0 : index
    %358 = vector.load %arg1[%c6, %c0_99, %c0_100] : memref<8x2x4xf32, #tpu.memory_space<vmem>>, vector<1x2x4xf32>
    %359 = vector.shape_cast %358 : vector<1x2x4xf32> to vector<2x4xf32>
    %cst_101 = arith.constant dense<0.000000e+00> : vector<2x96xf32>
    %360 = tpu.matmul %359, %0, %cst_101 {dimension_numbers = #tpu.dot_dimension_numbers<[1], [0], [0], [1], [0, 0, 1, 1], [], []>} : vector<2x4xf32>, vector<4x96xf32>, vector<2x96xf32> -> vector<2x96xf32>
    %361 = vector.broadcast %9 : vector<1x96xf32> to vector<2x96xf32>
    %362 = arith.addf %360, %361 : vector<2x96xf32>
    %cst_102 = arith.constant dense<0.000000e+00> : vector<2x96xf32>
    %363 = tpu.matmul %327, %4, %cst_102 {dimension_numbers = #tpu.dot_dimension_numbers<[1], [0], [0], [1], [0, 0, 1, 1], [], []>} : vector<2x32xf32>, vector<32x96xf32>, vector<2x96xf32> -> vector<2x96xf32>
    %364 = vector.broadcast %10 : vector<1x96xf32> to vector<2x96xf32>
    %365 = arith.addf %363, %364 : vector<2x96xf32>
    %366 = vector.extract_strided_slice %362 {offsets = [0, 0], sizes = [2, 64], strides = [1, 1]} : vector<2x96xf32> to vector<2x64xf32>
    %367 = vector.extract_strided_slice %365 {offsets = [0, 0], sizes = [2, 64], strides = [1, 1]} : vector<2x96xf32> to vector<2x64xf32>
    %368 = arith.addf %366, %367 : vector<2x64xf32>
    %369 = arith.negf %368 : vector<2x64xf32>
    %370 = math.exp %369 : vector<2x64xf32>
    %cst_103 = arith.constant 1.000000e+00 : f32
    %371 = vector.broadcast %cst_103 : f32 to vector<2x64xf32>
    %372 = arith.addf %371, %370 : vector<2x64xf32>
    %373 = arith.divf %371, %372 : vector<2x64xf32>
    %374 = vector.extract_strided_slice %373 {offsets = [0, 0], sizes = [2, 32], strides = [1, 1]} : vector<2x64xf32> to vector<2x32xf32>
    %375 = vector.extract_strided_slice %373 {offsets = [0, 32], sizes = [2, 32], strides = [1, 1]} : vector<2x64xf32> to vector<2x32xf32>
    %376 = vector.extract_strided_slice %362 {offsets = [0, 64], sizes = [2, 32], strides = [1, 1]} : vector<2x96xf32> to vector<2x32xf32>
    %377 = vector.extract_strided_slice %365 {offsets = [0, 64], sizes = [2, 32], strides = [1, 1]} : vector<2x96xf32> to vector<2x32xf32>
    %378 = arith.mulf %374, %377 : vector<2x32xf32>
    %379 = arith.addf %376, %378 : vector<2x32xf32>
    %380 = math.tanh %379 : vector<2x32xf32>
    %cst_104 = arith.constant 1.000000e+00 : f32
    %381 = vector.broadcast %cst_104 : f32 to vector<2x32xf32>
    %382 = arith.subf %381, %375 : vector<2x32xf32>
    %383 = arith.mulf %382, %380 : vector<2x32xf32>
    %384 = arith.mulf %375, %327 : vector<2x32xf32>
    %385 = arith.addf %383, %384 : vector<2x32xf32>
    %cst_105 = arith.constant dense<0.000000e+00> : vector<2x96xf32>
    %386 = tpu.matmul %385, %2, %cst_105 {dimension_numbers = #tpu.dot_dimension_numbers<[1], [0], [0], [1], [0, 0, 1, 1], [], []>} : vector<2x32xf32>, vector<32x96xf32>, vector<2x96xf32> -> vector<2x96xf32>
    %387 = vector.broadcast %13 : vector<1x96xf32> to vector<2x96xf32>
    %388 = arith.addf %386, %387 : vector<2x96xf32>
    %cst_106 = arith.constant dense<0.000000e+00> : vector<2x96xf32>
    %389 = tpu.matmul %353, %6, %cst_106 {dimension_numbers = #tpu.dot_dimension_numbers<[1], [0], [0], [1], [0, 0, 1, 1], [], []>} : vector<2x32xf32>, vector<32x96xf32>, vector<2x96xf32> -> vector<2x96xf32>
    %390 = vector.broadcast %14 : vector<1x96xf32> to vector<2x96xf32>
    %391 = arith.addf %389, %390 : vector<2x96xf32>
    %392 = vector.extract_strided_slice %388 {offsets = [0, 0], sizes = [2, 64], strides = [1, 1]} : vector<2x96xf32> to vector<2x64xf32>
    %393 = vector.extract_strided_slice %391 {offsets = [0, 0], sizes = [2, 64], strides = [1, 1]} : vector<2x96xf32> to vector<2x64xf32>
    %394 = arith.addf %392, %393 : vector<2x64xf32>
    %395 = arith.negf %394 : vector<2x64xf32>
    %396 = math.exp %395 : vector<2x64xf32>
    %cst_107 = arith.constant 1.000000e+00 : f32
    %397 = vector.broadcast %cst_107 : f32 to vector<2x64xf32>
    %398 = arith.addf %397, %396 : vector<2x64xf32>
    %399 = arith.divf %397, %398 : vector<2x64xf32>
    %400 = vector.extract_strided_slice %399 {offsets = [0, 0], sizes = [2, 32], strides = [1, 1]} : vector<2x64xf32> to vector<2x32xf32>
    %401 = vector.extract_strided_slice %399 {offsets = [0, 32], sizes = [2, 32], strides = [1, 1]} : vector<2x64xf32> to vector<2x32xf32>
    %402 = vector.extract_strided_slice %388 {offsets = [0, 64], sizes = [2, 32], strides = [1, 1]} : vector<2x96xf32> to vector<2x32xf32>
    %403 = vector.extract_strided_slice %391 {offsets = [0, 64], sizes = [2, 32], strides = [1, 1]} : vector<2x96xf32> to vector<2x32xf32>
    %404 = arith.mulf %400, %403 : vector<2x32xf32>
    %405 = arith.addf %402, %404 : vector<2x32xf32>
    %406 = math.tanh %405 : vector<2x32xf32>
    %cst_108 = arith.constant 1.000000e+00 : f32
    %407 = vector.broadcast %cst_108 : f32 to vector<2x32xf32>
    %408 = arith.subf %407, %401 : vector<2x32xf32>
    %409 = arith.mulf %408, %406 : vector<2x32xf32>
    %410 = arith.mulf %401, %353 : vector<2x32xf32>
    %411 = arith.addf %409, %410 : vector<2x32xf32>
    %c6_109 = arith.constant 6 : index
    %c0_110 = arith.constant 0 : index
    %c0_111 = arith.constant 0 : index
    %412 = vector.load %arg6[%c6_109, %c0_110, %c0_111] : memref<8x32x10xf32, #tpu.memory_space<vmem>>, vector<1x32x10xf32>
    %413 = vector.shape_cast %412 : vector<1x32x10xf32> to vector<32x10xf32>
    %cst_112 = arith.constant dense<0.000000e+00> : vector<2x10xf32>
    %414 = tpu.matmul %411, %413, %cst_112 {dimension_numbers = #tpu.dot_dimension_numbers<[1], [0], [0], [1], [0, 0, 1, 1], [], []>} : vector<2x32xf32>, vector<32x10xf32>, vector<2x10xf32> -> vector<2x10xf32>
    %415 = arith.addf %357, %414 : vector<2x10xf32>
    %c7 = arith.constant 7 : index
    %c0_113 = arith.constant 0 : index
    %c0_114 = arith.constant 0 : index
    %416 = vector.load %arg1[%c7, %c0_113, %c0_114] : memref<8x2x4xf32, #tpu.memory_space<vmem>>, vector<1x2x4xf32>
    %417 = vector.shape_cast %416 : vector<1x2x4xf32> to vector<2x4xf32>
    %cst_115 = arith.constant dense<0.000000e+00> : vector<2x96xf32>
    %418 = tpu.matmul %417, %0, %cst_115 {dimension_numbers = #tpu.dot_dimension_numbers<[1], [0], [0], [1], [0, 0, 1, 1], [], []>} : vector<2x4xf32>, vector<4x96xf32>, vector<2x96xf32> -> vector<2x96xf32>
    %419 = vector.broadcast %9 : vector<1x96xf32> to vector<2x96xf32>
    %420 = arith.addf %418, %419 : vector<2x96xf32>
    %cst_116 = arith.constant dense<0.000000e+00> : vector<2x96xf32>
    %421 = tpu.matmul %385, %4, %cst_116 {dimension_numbers = #tpu.dot_dimension_numbers<[1], [0], [0], [1], [0, 0, 1, 1], [], []>} : vector<2x32xf32>, vector<32x96xf32>, vector<2x96xf32> -> vector<2x96xf32>
    %422 = vector.broadcast %10 : vector<1x96xf32> to vector<2x96xf32>
    %423 = arith.addf %421, %422 : vector<2x96xf32>
    %424 = vector.extract_strided_slice %420 {offsets = [0, 0], sizes = [2, 64], strides = [1, 1]} : vector<2x96xf32> to vector<2x64xf32>
    %425 = vector.extract_strided_slice %423 {offsets = [0, 0], sizes = [2, 64], strides = [1, 1]} : vector<2x96xf32> to vector<2x64xf32>
    %426 = arith.addf %424, %425 : vector<2x64xf32>
    %427 = arith.negf %426 : vector<2x64xf32>
    %428 = math.exp %427 : vector<2x64xf32>
    %cst_117 = arith.constant 1.000000e+00 : f32
    %429 = vector.broadcast %cst_117 : f32 to vector<2x64xf32>
    %430 = arith.addf %429, %428 : vector<2x64xf32>
    %431 = arith.divf %429, %430 : vector<2x64xf32>
    %432 = vector.extract_strided_slice %431 {offsets = [0, 0], sizes = [2, 32], strides = [1, 1]} : vector<2x64xf32> to vector<2x32xf32>
    %433 = vector.extract_strided_slice %431 {offsets = [0, 32], sizes = [2, 32], strides = [1, 1]} : vector<2x64xf32> to vector<2x32xf32>
    %434 = vector.extract_strided_slice %420 {offsets = [0, 64], sizes = [2, 32], strides = [1, 1]} : vector<2x96xf32> to vector<2x32xf32>
    %435 = vector.extract_strided_slice %423 {offsets = [0, 64], sizes = [2, 32], strides = [1, 1]} : vector<2x96xf32> to vector<2x32xf32>
    %436 = arith.mulf %432, %435 : vector<2x32xf32>
    %437 = arith.addf %434, %436 : vector<2x32xf32>
    %438 = math.tanh %437 : vector<2x32xf32>
    %cst_118 = arith.constant 1.000000e+00 : f32
    %439 = vector.broadcast %cst_118 : f32 to vector<2x32xf32>
    %440 = arith.subf %439, %433 : vector<2x32xf32>
    %441 = arith.mulf %440, %438 : vector<2x32xf32>
    %442 = arith.mulf %433, %385 : vector<2x32xf32>
    %443 = arith.addf %441, %442 : vector<2x32xf32>
    %cst_119 = arith.constant dense<0.000000e+00> : vector<2x96xf32>
    %444 = tpu.matmul %443, %2, %cst_119 {dimension_numbers = #tpu.dot_dimension_numbers<[1], [0], [0], [1], [0, 0, 1, 1], [], []>} : vector<2x32xf32>, vector<32x96xf32>, vector<2x96xf32> -> vector<2x96xf32>
    %445 = vector.broadcast %13 : vector<1x96xf32> to vector<2x96xf32>
    %446 = arith.addf %444, %445 : vector<2x96xf32>
    %cst_120 = arith.constant dense<0.000000e+00> : vector<2x96xf32>
    %447 = tpu.matmul %411, %6, %cst_120 {dimension_numbers = #tpu.dot_dimension_numbers<[1], [0], [0], [1], [0, 0, 1, 1], [], []>} : vector<2x32xf32>, vector<32x96xf32>, vector<2x96xf32> -> vector<2x96xf32>
    %448 = vector.broadcast %14 : vector<1x96xf32> to vector<2x96xf32>
    %449 = arith.addf %447, %448 : vector<2x96xf32>
    %450 = vector.extract_strided_slice %446 {offsets = [0, 0], sizes = [2, 64], strides = [1, 1]} : vector<2x96xf32> to vector<2x64xf32>
    %451 = vector.extract_strided_slice %449 {offsets = [0, 0], sizes = [2, 64], strides = [1, 1]} : vector<2x96xf32> to vector<2x64xf32>
    %452 = arith.addf %450, %451 : vector<2x64xf32>
    %453 = arith.negf %452 : vector<2x64xf32>
    %454 = math.exp %453 : vector<2x64xf32>
    %cst_121 = arith.constant 1.000000e+00 : f32
    %455 = vector.broadcast %cst_121 : f32 to vector<2x64xf32>
    %456 = arith.addf %455, %454 : vector<2x64xf32>
    %457 = arith.divf %455, %456 : vector<2x64xf32>
    %458 = vector.extract_strided_slice %457 {offsets = [0, 0], sizes = [2, 32], strides = [1, 1]} : vector<2x64xf32> to vector<2x32xf32>
    %459 = vector.extract_strided_slice %457 {offsets = [0, 32], sizes = [2, 32], strides = [1, 1]} : vector<2x64xf32> to vector<2x32xf32>
    %460 = vector.extract_strided_slice %446 {offsets = [0, 64], sizes = [2, 32], strides = [1, 1]} : vector<2x96xf32> to vector<2x32xf32>
    %461 = vector.extract_strided_slice %449 {offsets = [0, 64], sizes = [2, 32], strides = [1, 1]} : vector<2x96xf32> to vector<2x32xf32>
    %462 = arith.mulf %458, %461 : vector<2x32xf32>
    %463 = arith.addf %460, %462 : vector<2x32xf32>
    %464 = math.tanh %463 : vector<2x32xf32>
    %cst_122 = arith.constant 1.000000e+00 : f32
    %465 = vector.broadcast %cst_122 : f32 to vector<2x32xf32>
    %466 = arith.subf %465, %459 : vector<2x32xf32>
    %467 = arith.mulf %466, %464 : vector<2x32xf32>
    %468 = arith.mulf %459, %411 : vector<2x32xf32>
    %469 = arith.addf %467, %468 : vector<2x32xf32>
    %c7_123 = arith.constant 7 : index
    %c0_124 = arith.constant 0 : index
    %c0_125 = arith.constant 0 : index
    %470 = vector.load %arg6[%c7_123, %c0_124, %c0_125] : memref<8x32x10xf32, #tpu.memory_space<vmem>>, vector<1x32x10xf32>
    %471 = vector.shape_cast %470 : vector<1x32x10xf32> to vector<32x10xf32>
    %cst_126 = arith.constant dense<0.000000e+00> : vector<2x10xf32>
    %472 = tpu.matmul %469, %471, %cst_126 {dimension_numbers = #tpu.dot_dimension_numbers<[1], [0], [0], [1], [0, 0, 1, 1], [], []>} : vector<2x32xf32>, vector<32x10xf32>, vector<2x10xf32> -> vector<2x10xf32>
    %473 = arith.addf %415, %472 : vector<2x10xf32>
    %c0_127 = arith.constant 0 : index
    %c0_128 = arith.constant 0 : index
    %474 = vector.load %arg7[%c0_127, %c0_128] : memref<1x10xf32, #tpu.memory_space<vmem>>, vector<1x10xf32>
    %475 = vector.broadcast %474 : vector<1x10xf32> to vector<2x10xf32>
    %476 = arith.addf %473, %475 : vector<2x10xf32>
    %c0_129 = arith.constant 0 : index
    %c0_130 = arith.constant 0 : index
    %477 = vector.load %arg8[%c0_129, %c0_130] : memref<2x10xf32, #tpu.memory_space<vmem>>, vector<2x10xf32>
    tpu.vector_store %arg8[%c0_129, %c0_130], %476 {strides = array<i32>} : memref<2x10xf32, #tpu.memory_space<vmem>>, vector<2x10xf32>,
    return
  }
  func.func @transform_0(%arg0: i32) -> (i32, i32, i32) {
    %c0_i32 = arith.constant 0 : i32
    %c0_i32_0 = arith.constant 0 : i32
    %c0_i32_1 = arith.constant 0 : i32
    %c0_i32_2 = arith.constant 0 : i32
    return %c0_i32, %c0_i32_0, %c0_i32_1 : i32, i32, i32
  }
  func.func @transform_1(%arg0: i32) -> (i32, i32) {
    %c0_i32 = arith.constant 0 : i32
    %c0_i32_0 = arith.constant 0 : i32
    %c0_i32_1 = arith.constant 0 : i32
    return %c0_i32, %c0_i32_0 : i32, i32
  }
  func.func @transform_2(%arg0: i32) -> (i32, i32, i32) {
    %c0_i32 = arith.constant 0 : i32
    %c0_i32_0 = arith.constant 0 : i32
    %c0_i32_1 = arith.constant 0 : i32
    %c0_i32_2 = arith.constant 0 : i32
    return %c0_i32, %c0_i32_0, %c0_i32_1 : i32, i32, i32
  }
  func.func @transform_3(%arg0: i32) -> (i32, i32, i32) {
    %c0_i32 = arith.constant 0 : i32
    %c0_i32_0 = arith.constant 0 : i32
    %c0_i32_1 = arith.constant 0 : i32
    %c0_i32_2 = arith.constant 0 : i32
    return %c0_i32, %c0_i32_0, %c0_i32_1 : i32, i32, i32
  }
  func.func @transform_4(%arg0: i32) -> (i32, i32, i32) {
    %c0_i32 = arith.constant 0 : i32
    %c0_i32_0 = arith.constant 0 : i32
    %c0_i32_1 = arith.constant 0 : i32
    %c0_i32_2 = arith.constant 0 : i32
    return %c0_i32, %c0_i32_0, %c0_i32_1 : i32, i32, i32
  }
  func.func @transform_5(%arg0: i32) -> (i32, i32, i32) {
    %c0_i32 = arith.constant 0 : i32
    %c0_i32_0 = arith.constant 0 : i32
    %c0_i32_1 = arith.constant 0 : i32
    %c0_i32_2 = arith.constant 0 : i32
    return %c0_i32, %c0_i32_0, %c0_i32_1 : i32, i32, i32
  }
  func.func @transform_6(%arg0: i32) -> (i32, i32) {
    %c0_i32 = arith.constant 0 : i32
    %c0_i32_0 = arith.constant 0 : i32
    %c0_i32_1 = arith.constant 0 : i32
    return %c0_i32, %c0_i32_0 : i32, i32
  }
  func.func @transform_7(%arg0: i32) -> (i32, i32) {
    %c0_i32 = arith.constant 0 : i32
    %c0_i32_0 = arith.constant 0 : i32
    %c0_i32_1 = arith.constant 0 : i32
    return %c0_i32, %c0_i32_0 : i32, i32
  }
}

</mosaic_0001>

<bundles_post_ra>
// kernel: tpu_custom_call.1
= control target key start
LH: loop header
LB: loop body
LE: loop exit
PB: predicated region body
PF: predicated region fallthrough
CT: control target
= control target key end

     0   :  { %vm50_vm0 = vcmask 1043456   ;;  %vm46_vm1 = vcmask 31744   ;;  %s2477_s0 = inlined_call_operand.vmem [shape: f32[8,2,4], index: 0, kind: input, shape index: {}]   ;;  %s2478_s1 = inlined_call_operand.vmem [shape: f32[4,96], index: 1, kind: input, shape index: {}]   ;;  %s2479_s2 = inlined_call_operand.vmem [shape: f32[1,32,96], index: 2, kind: input, shape index: {}]   ;;  %s2480_s3 = inlined_call_operand.vmem [shape: f32[2,32,96], index: 3, kind: input, shape index: {}]   ;;  %s2481_s4 = inlined_call_operand.vmem [shape: f32[2,2,96], index: 4, kind: input, shape index: {}]   ;;  %s2482_s5 = inlined_call_operand.vmem [shape: f32[8,32,10], index: 5, kind: input, shape index: {}]   ;;  %s2483_s6 = inlined_call_operand.vmem [shape: f32[1,10], index: 6, kind: input, shape index: {}]   ;;  %s2484_s7 = inlined_call_operand.hbm [shape: f32[2,10], index: 7, kind: output, shape index: {}]  }
   0x1   :  { %v1908_v0 = vld [vmem:[%s2478_s1] sm:$0xf] }
   0x2   :  { %v44_v1 = vld [vmem:[%s2477_s0] sm:$0x3]  ;;  %1626 = vmatpush.msk.msra.mxu0 %vm50_vm0, %v1908_v0  ;;  %1632 = vmatpush.msk.msra.mxu2 %vm50_vm0, %v1908_v0 }
   0x3   :  { %v41_v2 = vld [vmem:[%s2481_s4] sm:$0x3]  ;;  %1627 = vmatmul.msk.f32.vlgmr.msra.gmra.mxu0 %vm46_vm1, %v44_v1 }
   0x4   :  { %v1921_v3 = vperm.slane %v41_v2, 1 }
   0x5   :  { %12 = vsyncpa [#allocation3], 0  ;;  %s1862_s30 = smov 64   ;;  %v1925_v4 = vperm.slane %v41_v2, 0  ;;  %s1863_s8 = smov 96   ;;  %v1934_v26 = vld [vmem:[%s2479_s2 + $0x18] sm:$0xff] }
   0x6   :  { %96 = vrot.lane.b32.xlu0 %v1921_v3, %s1862_s30  ;;  %v1939_v27 = vld [vmem:[%s2480_s3 + $0x18] sm:$0xff]  ;;  %v1944_v28 = vld [vmem:[%s2479_s2 + $0x10] sm:$0xff]  ;;  %131 = vmatpush.msra.mxu1 %v1934_v26  ;;  %v1956_v30 = vld [vmem:[%s2479_s2 + $0x8] sm:$0xff]  ;;  %vm116_vm6 = vcmask 261120   ;;  %s1864_s23 = smov [#allocation2]   ;;  %s1612_s26 = sshll.u32 %s2484_s7, 4  ;;  %s1613_s26 = int_to_ptr.hbm [resolvable:$true] %s1612_s26 }
   0x7   :  { %218 = vmatpush.msra.mxu3 %v1939_v27  ;;  %v1951_v29 = vld [vmem:[%s2480_s3 + $0x10] sm:$0xff]  ;;  %v1961_v31 = vld [vmem:[%s2480_s3 + $0x8] sm:$0xff]  ;;  %282 = vmatpush.msrb.mxu0 %v1934_v26  ;;  %v1969_v32 = vld [vmem:[%s2479_s2] sm:$0xff] }
   0x8   :  { %132 = vmatpush.msra.mxu1 %v1944_v28  ;;  %v1974_v33 = vld [vmem:[%s2480_s3] sm:$0xff] }
   0x9   :  { %219 = vmatpush.msra.mxu3 %v1951_v29  ;;  %283 = vmatpush.msrb.mxu0 %v1944_v28  ;;  %v1631_v37 = vld [vmem:[%s2477_s0 + $0x2] sm:$0x3] }
   0xa   :  { %133 = vmatpush.msra.mxu1 %v1956_v30  ;;  %1633 = vmatmul.msk.f32.vlgmr.msra.gmra.mxu2 %vm46_vm1, %v1631_v37  ;;  %v1625_v38 = vld [vmem:[%s2481_s4 + $0x2] sm:$0x3]  ;;  %v2020_v37 = vld [vmem:[%s2480_s3 + $0x38] sm:$0xff] }
   0xb   :  { %220 = vmatpush.msra.mxu3 %v1961_v31  ;;  %284 = vmatpush.msrb.mxu0 %v1956_v30  ;;  %v1996_v39 = vperm.slane %v1625_v38, 1  ;;  %v2002_v41 = vperm.slane %v1625_v38, 0  ;;  %v180_v38 = vld [vmem:[%s2482_s5 + $0x18] sm:$0xff] }
   0xc   :  { %134 = vmatpush.msra.mxu1 %v1969_v32  ;;  %307 = vmatpush.msrb.mxu2 %v2020_v37 }
   0xd   :  { %221 = vmatpush.msra.mxu3 %v1974_v33  ;;  %285 = vmatpush.msrb.mxu0 %v1969_v32 }
   0xe   :  { %161 = vrot.lane.b32.xlu2 %v1996_v39, %s1862_s30 }
   0xf   :  { %1646 = vmatpush.msk.msra.mxu0 %vm50_vm0, %v1908_v0  ;;  %396 = vmatpush.msrb.mxu3 %v180_v38 }
  0x68   :  { %v162_v57 = vpop.permute.xlu2 %161 }
  0x78   :  { %v97_v18 = vpop.permute.xlu0 %96 }
  0x80   :  { %v71_v5 = vpop.f32.mrf.mxu0 }
  0x81   :  { %v72_v6 = vadd.f32 %v71_v5, %v1925_v4 }
  0x83   :  { %v75_v7 = vadd.f32 %v1921_v3, %v72_v6 }
  0x85   :  { %v1628_v8 = vmul.f32 -1.442695, %v75_v7 }
  0x87   :  { %1727 = vpow2.f32 %v1628_v8 }
  0x8d   :  { %v1728_v9 = vpop.eup %1727  ;;  %v203_v62 = vpop.f32.mrf.mxu2 }
  0x8e   :  { %v79_v10 = vadd.f32 1.0, %v1728_v9  ;;  %v204_v63 = vadd.f32 %v203_v62, %v1925_v4 }
  0x90   :  { %1729 = vrcp.f32 %v79_v10  ;;  %v91_v14 = vand.u32 2147483648, %v79_v10  ;;  %v89_v16 = vand.u32 2147483647, %v79_v10  ;;  %vm85_vm3 = vweird.f32 %v79_v10 }
  0x92   :  { %v92_v19 = vor.u32 1.1754944e-38, %v91_v14  ;;  %vm90_vm5 = vcmp.eq.f32.partialorder %v89_v16, 8.507059e+37 }
  0x96   :  { %v1730_v11 = vpop.eup %1729 }
  0x97   :  { %v81_v12 = vmul.f32 %v1730_v11, %v79_v10  ;;  %vm86_vm2 = vweird.f32 %v1730_v11 }
  0x98   :  { %vm87_vm4 = vmor %vm85_vm3, %vm86_vm2 }
  0x99   :  { %v82_v13 = vsub.f32 1.0, %v81_v12 }
  0x9b   :  { %v83_v15 = vmul.f32 %v1730_v11, %v82_v13 }
  0x9d   :  { %v84_v17 = vadd.f32 %v1730_v11, %v83_v15 }
  0x9f   :  { %v88_v20 = vsel %vm87_vm4, %v1730_v11, %v84_v17 }
  0xa0   :  { %v93_v21 = vsel %vm90_vm5, %v92_v19, %v88_v20 }
  0xa1   :  { %v99_v22 = vmul.f32 %v97_v18, %v93_v21  ;;  %v106_v34 = vsub.f32 1.0, %v93_v21 }
  0xa3   :  { %101 = vrot.lane.b32.xlu0 %v99_v22, %s1862_s30 }
 0x115   :  { %v102_v23 = vpop.permute.xlu0 %101 }
 0x116   :  { %v104_v24 = vadd.f32 %v102_v23, %v72_v6 }
 0x118   :  { %1731 = vtanh.f32 %v104_v24 }
 0x11e   :  { %v1732_v25 = vpop.eup %1731 }
 0x11f   :  { %108 = vrot.lane.b32.xlu1 %v1732_v25, %s1863_s8 }
 0x191   :  { %v109_v35 = vpop.permute.xlu1 %108 }
 0x192   :  { %v1985_v36 = vmul.f32 %v109_v35, %v106_v34 }
 0x194   :  { %114 = vrot.lane.b32.xlu1 %v1985_v36, %s1863_s8 }
 0x206   :  { %v115_v40 = vpop.permute.xlu1 %114 }
 0x207   :  { %1629 = vmatmul.msk.f32.vlgmr.msra.gmra.mxu1 %vm116_vm6, %v115_v40  ;;  %1634 = vmatmul.msk.f32.vlgmr.msra.gmra.mxu3 %vm116_vm6, %v115_v40  ;;  %v2028_v40 = vld [vmem:[%s2480_s3 + $0x30] sm:$0xff] }
 0x208   :  { %308 = vmatpush.msrb.mxu2 %v2028_v40 }
 0x284   :  { %v136_v42 = vpop.f32.mrf.mxu1 }
 0x285   :  { %v137_v43 = vadd.f32 %v136_v42, %v2002_v41  ;;  %v179_v42 = vld [vmem:[%s2482_s5 + $0x10] sm:$0xff] }
 0x286   :  { %397 = vmatpush.msrb.mxu3 %v179_v42 }
 0x287   :  { %v140_v44 = vadd.f32 %v1996_v39, %v137_v43 }
 0x289   :  { %v1630_v45 = vmul.f32 -1.442695, %v140_v44  ;;  %v178_v44 = vld [vmem:[%s2482_s5 + $0x8] sm:$0xff] }
 0x28a   :  { %v223_v46 = vpop.f32.mrf.mxu3  ;;  %398 = vmatpush.msrb.mxu3 %v178_v44 }
 0x28b   :  { %1733 = vpow2.f32 %v1630_v45  ;;  %v224_v47 = vadd.f32 %v223_v46, %v1921_v3  ;;  %v2046_v45 = vld [vmem:[%s2480_s3 + $0x20] sm:$0xff] }
 0x28c   :  { %v177_v46 = vld [vmem:[%s2482_s5] sm:$0xff] }
 0x28d   :  { %247 = vrot.lane.b32.xlu2 %v224_v47, %s1862_s30  ;;  %v226_v1 = vadd.f32 %v224_v47, %v204_v63  ;;  %399 = vmatpush.msrb.mxu3 %v177_v46 }
 0x28f   :  { %v1635_v2 = vmul.f32 -1.442695, %v226_v1  ;;  %525 = vmatpush.msra.mxu3 %v2020_v37 }
 0x291   :  { %v1734_v48 = vpop.eup %1733  ;;  %526 = vmatpush.msra.mxu3 %v2028_v40 }
 0x292   :  { %v144_v49 = vadd.f32 1.0, %v1734_v48 }
 0x294   :  { %1735 = vrcp.f32 %v144_v49  ;;  %v156_v53 = vand.u32 2147483648, %v144_v49  ;;  %v154_v55 = vand.u32 2147483647, %v144_v49  ;;  %vm150_vm8 = vweird.f32 %v144_v49 }
 0x295   :  { %1737 = vpow2.f32 %v1635_v2 }
 0x296   :  { %v157_v58 = vor.u32 1.1754944e-38, %v156_v53  ;;  %vm155_vm10 = vcmp.eq.f32.partialorder %v154_v55, 8.507059e+37  ;;  %v1645_v53 = vld [vmem:[%s2477_s0 + $0x4] sm:$0x3] }
 0x29a   :  { %v1736_v50 = vpop.eup %1735 }
 0x29b   :  { %v146_v51 = vmul.f32 %v1736_v50, %v144_v49  ;;  %vm151_vm7 = vweird.f32 %v1736_v50  ;;  %v1738_v5 = vpop.eup %1737 }
 0x29c   :  { %vm152_vm9 = vmor %vm150_vm8, %vm151_vm7  ;;  %v230_v6 = vadd.f32 1.0, %v1738_v5 }
 0x29d   :  { %v147_v52 = vsub.f32 1.0, %v146_v51 }
 0x29e   :  { %1739 = vrcp.f32 %v230_v6  ;;  %v242_v12 = vand.u32 2147483648, %v230_v6  ;;  %vm236_vm12 = vweird.f32 %v230_v6  ;;  %v240_v13 = vand.u32 2147483647, %v230_v6 }
 0x29f   :  { %v148_v54 = vmul.f32 %v1736_v50, %v147_v52 }
 0x2a0   :  { %v243_v15 = vor.u32 1.1754944e-38, %v242_v12  ;;  %vm241_vm14 = vcmp.eq.f32.partialorder %v240_v13, 8.507059e+37 }
 0x2a1   :  { %v149_v56 = vadd.f32 %v1736_v50, %v148_v54 }
 0x2a3   :  { %v153_v59 = vsel %vm152_vm9, %v1736_v50, %v149_v56 }
 0x2a4   :  { %v158_v60 = vsel %vm155_vm10, %v157_v58, %v153_v59  ;;  %v1740_v7 = vpop.eup %1739 }
 0x2a5   :  { %v164_v61 = vmul.f32 %v162_v57, %v158_v60  ;;  %v232_v8 = vmul.f32 %v1740_v7, %v230_v6  ;;  %vm237_vm11 = vweird.f32 %v1740_v7  ;;  %v171_v25 = vsub.f32 1.0, %v158_v60 }
 0x2a6   :  { %vm238_vm13 = vmor %vm236_vm12, %vm237_vm11 }
 0x2a7   :  { %166 = vrot.lane.b32.xlu0 %v164_v61, %s1862_s30  ;;  %v233_v9 = vsub.f32 1.0, %v232_v8 }
 0x2a9   :  { %v234_v10 = vmul.f32 %v1740_v7, %v233_v9 }
 0x2ab   :  { %v235_v11 = vadd.f32 %v1740_v7, %v234_v10 }
 0x2ad   :  { %v239_v14 = vsel %vm238_vm13, %v1740_v7, %v235_v11 }
 0x2ae   :  { %v244_v17 = vsel %vm241_vm14, %v243_v15, %v239_v14 }
 0x2af   :  { %v257_v47 = vsub.f32 1.0, %v244_v17  ;;  %v263_v49 = vmul.f32 %v244_v17, %v1985_v36 }
 0x2e7   :  { %v248_v16 = vpop.permute.xlu2 %247 }
 0x2e8   :  { %v250_v18 = vmul.f32 %v248_v16, %v244_v17 }
 0x2ea   :  { %252 = vrot.lane.b32.xlu1 %v250_v18, %s1862_s30 }
 0x319   :  { %v167_v19 = vpop.permute.xlu0 %166 }
 0x31a   :  { %v169_v20 = vadd.f32 %v167_v19, %v137_v43  ;;  %v2037_v43 = vld [vmem:[%s2480_s3 + $0x28] sm:$0xff] }
 0x31b   :  { %309 = vmatpush.msrb.mxu2 %v2037_v43  ;;  %527 = vmatpush.msra.mxu3 %v2037_v43 }
 0x31c   :  { %1741 = vtanh.f32 %v169_v20 }
 0x31d   :  { %310 = vmatpush.msrb.mxu2 %v2046_v45  ;;  %528 = vmatpush.msra.mxu3 %v2046_v45 }
 0x31f   :  { %441 = vmatpush.msra.mxu2 %v1939_v27 }
 0x321   :  { %442 = vmatpush.msra.mxu2 %v1951_v29 }
 0x322   :  { %v1742_v21 = vpop.eup %1741 }
 0x323   :  { %173 = vrot.lane.b32.xlu2 %v1742_v21, %s1863_s8  ;;  %443 = vmatpush.msra.mxu2 %v1961_v31 }
 0x325   :  { %444 = vmatpush.msra.mxu2 %v1974_v33 }
 0x35c   :  { %v253_v22 = vpop.permute.xlu1 %252 }
 0x35d   :  { %v255_v23 = vadd.f32 %v253_v22, %v204_v63 }
 0x35f   :  { %1743 = vtanh.f32 %v255_v23 }
 0x365   :  { %v1744_v24 = vpop.eup %1743 }
 0x366   :  { %259 = vrot.lane.b32.xlu0 %v1744_v24, %s1863_s8 }
 0x37d   :  { %v174_v34 = vpop.permute.xlu2 %173 }
 0x37e   :  { %v2013_v35 = vmul.f32 %v174_v34, %v171_v25 }
 0x380   :  { %291 = vrot.lane.b32.xlu1 %v2013_v35, %s1863_s8 }
 0x3d8   :  { %v260_v48 = vpop.permute.xlu0 %259 }
 0x3d9   :  { %v262_v50 = vmul.f32 %v260_v48, %v257_v47 }
 0x3db   :  { %v2062_v51 = vadd.f32 %v263_v49, %v262_v50 }
 0x3dd   :  { %266 = vrot.lane.b32.xlu2 %v2062_v51, %s1863_s8 }
 0x3f2   :  { %v292_v52 = vpop.permute.xlu1 %291 }
 0x3f3   :  { %1637 = vmatmul.msk.f32.vlgmr.msrb.gmra.mxu2 %vm116_vm6, %v292_v52  ;;  %1644 = vmatmul.msk.f32.vlgmr.msrb.gmra.mxu3 %vm116_vm6, %v292_v52 }
 0x3f4   :  { %1659 = vmatpush.msk.msrb.mxu2 %vm50_vm0, %v1908_v0  ;;  %704 = vmatpush.msrb.mxu3 %v1934_v26 }
 0x3f6   :  { %705 = vmatpush.msrb.mxu3 %v1944_v28 }
 0x3f8   :  { %706 = vmatpush.msrb.mxu3 %v1956_v30 }
 0x3fa   :  { %707 = vmatpush.msrb.mxu3 %v1969_v32 }
 0x437   :  { %v267_v36 = vpop.permute.xlu2 %266 }
 0x438   :  { %1636 = vmatmul.msk.f32.vlgmr.msrb.gmra.mxu0 %vm116_vm6, %v267_v36  ;;  %1648 = vmatmul.msk.f32.vlgmr.msra.gmra.mxu2 %vm116_vm6, %v267_v36 }
 0x440   :  { %1647 = vmatmul.msk.f32.vlgmr.msra.gmra.mxu0 %vm46_vm1, %v1645_v53 }
 0x476   :  { %v312_v54 = vpop.f32.mrf.mxu2 }
 0x477   :  { %v313_v55 = vadd.f32 %v312_v54, %v1996_v39 }
 0x479   :  { %336 = vrot.lane.b32.xlu0 %v313_v55, %s1862_s30 }
 0x4b5   :  { %v287_v56 = vpop.f32.mrf.mxu0 }
 0x4b6   :  { %v288_v57 = vadd.f32 %v287_v56, %v2002_v41 }
 0x4b8   :  { %v315_v58 = vadd.f32 %v313_v55, %v288_v57 }
 0x4ba   :  { %v1638_v61 = vmul.f32 -1.442695, %v315_v58 }
 0x4bb   :  { %v446_v59 = vpop.f32.mrf.mxu2 }
 0x4bc   :  { %v447_v60 = vadd.f32 %v446_v59, %v1921_v3  ;;  %1745 = vpow2.f32 %v1638_v61  ;;  %v1641_v61 = vld [vmem:[%s2482_s5 + $0x30] sm:$0xff] }
 0x4bd   :  { %v426_v15 = vpop.f32.mrf.mxu0 }
 0x4be   :  { %470 = vrot.lane.b32.xlu1 %v447_v60, %s1862_s30  ;;  %v427_v16 = vadd.f32 %v426_v15, %v1925_v4 }
 0x4c0   :  { %v449_v17 = vadd.f32 %v447_v60, %v427_v16 }
 0x4c2   :  { %v1746_v62 = vpop.eup %1745  ;;  %v1649_v18 = vmul.f32 -1.442695, %v449_v17 }
 0x4c3   :  { %v319_v63 = vadd.f32 1.0, %v1746_v62  ;;  %v1640_v62 = vld [vmem:[%s2482_s5 + $0x28] sm:$0xff] }
 0x4c5   :  { %1747 = vrcp.f32 %v319_v63  ;;  %v331_v8 = vand.u32 2147483648, %v319_v63  ;;  %vm325_vm2 = vweird.f32 %v319_v63  ;;  %v329_v9 = vand.u32 2147483647, %v319_v63 }
 0x4c6   :  { %1749 = vpow2.f32 %v1649_v18 }
 0x4c7   :  { %v332_v11 = vor.u32 1.1754944e-38, %v331_v8  ;;  %vm330_vm4 = vcmp.eq.f32.partialorder %v329_v9, 8.507059e+37  ;;  %v2134_v9 = vpop.f32.mrf.mxu3 }
 0x4cb   :  { %v1748_v1 = vpop.eup %1747 }
 0x4cc   :  { %v321_v2 = vmul.f32 %v1748_v1, %v319_v63  ;;  %vm326_vm15 = vweird.f32 %v1748_v1  ;;  %v1750_v19 = vpop.eup %1749 }
 0x4cd   :  { %vm327_vm3 = vmor %vm325_vm2, %vm326_vm15  ;;  %v453_v20 = vadd.f32 1.0, %v1750_v19 }
 0x4ce   :  { %v322_v5 = vsub.f32 1.0, %v321_v2 }
 0x4cf   :  { %1751 = vrcp.f32 %v453_v20  ;;  %v465_v34 = vand.u32 2147483648, %v453_v20  ;;  %vm459_vm7 = vweird.f32 %v453_v20  ;;  %v463_v38 = vand.u32 2147483647, %v453_v20 }
 0x4d0   :  { %v323_v6 = vmul.f32 %v1748_v1, %v322_v5 }
 0x4d1   :  { %v466_v44 = vor.u32 1.1754944e-38, %v465_v34  ;;  %vm464_vm9 = vcmp.eq.f32.partialorder %v463_v38, 8.507059e+37 }
 0x4d2   :  { %v324_v7 = vadd.f32 %v1748_v1, %v323_v6 }
 0x4d4   :  { %v328_v10 = vsel %vm327_vm3, %v1748_v1, %v324_v7 }
 0x4d5   :  { %v333_v12 = vsel %vm330_vm4, %v332_v11, %v328_v10  ;;  %v1752_v21 = vpop.eup %1751 }
 0x4d6   :  { %v455_v22 = vmul.f32 %v1752_v21, %v453_v20  ;;  %vm460_vm5 = vweird.f32 %v1752_v21  ;;  %v346_v55 = vsub.f32 1.0, %v333_v12  ;;  %v352_v58 = vmul.f32 %v333_v12, %v2013_v35  ;;  %v1639_v35 = vld [vmem:[%s2482_s5 + $0x20] sm:$0xff] }
 0x4d7   :  { %vm461_vm8 = vmor %vm459_vm7, %vm460_vm5 }
 0x4d8   :  { %v456_v23 = vsub.f32 1.0, %v455_v22 }
 0x4da   :  { %v457_v24 = vmul.f32 %v1752_v21, %v456_v23 }
 0x4dc   :  { %v458_v25 = vadd.f32 %v1752_v21, %v457_v24 }
 0x4de   :  { %v462_v42 = vsel %vm461_vm8, %v1752_v21, %v458_v25 }
 0x4df   :  { %v467_v47 = vsel %vm464_vm9, %v466_v44, %v462_v42 }
 0x4e0   :  { %v480_v63 = vsub.f32 1.0, %v467_v47  ;;  %v486_v2 = vmul.f32 %v467_v47, %v2062_v51  ;;  %v1658_v51 = vld [vmem:[%s2477_s0 + $0x6] sm:$0x3] }
 0x4e1   :  { %1660 = vmatmul.msk.f32.vlgmr.msrb.gmra.mxu2 %vm46_vm1, %v1658_v51 }
 0x4eb   :  { %v337_v13 = vpop.permute.xlu0 %336 }
 0x4ec   :  { %v339_v14 = vmul.f32 %v337_v13, %v333_v12 }
 0x4ee   :  { %341 = vrot.lane.b32.xlu2 %v339_v14, %s1862_s30 }
 0x530   :  { %v471_v46 = vpop.permute.xlu1 %470 }
 0x531   :  { %v473_v48 = vmul.f32 %v471_v46, %v467_v47 }
 0x533   :  { %475 = vrot.lane.b32.xlu0 %v473_v48, %s1862_s30 }
 0x548   :  { %v342_v49 = vpop.permute.xlu2 %341 }
 0x549   :  { %v344_v50 = vadd.f32 %v342_v49, %v288_v57  ;;  %v1642_v57 = vld [vmem:[%s2482_s5 + $0x38] sm:$0xff] }
 0x54a   :  { %376 = vmatpush.msrb.mxu1 %v1642_v57 }
 0x54b   :  { %1753 = vtanh.f32 %v344_v50 }
 0x54c   :  { %377 = vmatpush.msrb.mxu1 %v1641_v61 }
 0x54e   :  { %378 = vmatpush.msrb.mxu1 %v1640_v62 }
 0x550   :  { %379 = vmatpush.msrb.mxu1 %v1639_v35 }
 0x551   :  { %v1754_v52 = vpop.eup %1753 }
 0x552   :  { %348 = vrot.lane.b32.xlu1 %v1754_v52, %s1863_s8  ;;  %505 = vmatpush.msra.mxu1 %v1934_v26 }
 0x554   :  { %506 = vmatpush.msra.mxu1 %v1944_v28 }
 0x556   :  { %507 = vmatpush.msra.mxu1 %v1956_v30 }
 0x558   :  { %508 = vmatpush.msra.mxu1 %v1969_v32 }
 0x564   :  { %v625_v49 = vpop.f32.mrf.mxu2 }
 0x565   :  { %v626_v50 = vadd.f32 %v625_v49, %v1925_v4 }
 0x5a5   :  { %v476_v36 = vpop.permute.xlu0 %475 }
 0x5a6   :  { %v478_v53 = vadd.f32 %v476_v36, %v427_v16 }
 0x5a8   :  { %1755 = vtanh.f32 %v478_v53 }
 0x5ae   :  { %v1756_v54 = vpop.eup %1755 }
 0x5af   :  { %482 = vrot.lane.b32.xlu2 %v1756_v54, %s1863_s8 }
 0x5c4   :  { %v349_v56 = vpop.permute.xlu1 %348 }
 0x5c5   :  { %v351_v59 = vmul.f32 %v349_v56, %v346_v55 }
 0x5c7   :  { %v2091_v60 = vadd.f32 %v352_v58, %v351_v59 }
 0x5c9   :  { %360 = vrot.lane.b32.xlu0 %v2091_v60, %s1863_s8 }
 0x609   :  { %v483_v1 = vpop.permute.xlu2 %482 }
 0x60a   :  { %v485_v5 = vmul.f32 %v483_v1, %v480_v63 }
 0x60c   :  { %v2112_v6 = vadd.f32 %v486_v2, %v485_v5 }
 0x60e   :  { %489 = vrot.lane.b32.xlu1 %v2112_v6, %s1863_s8 }
 0x63b   :  { %v361_v7 = vpop.permute.xlu0 %360 }
 0x63c   :  { %1643 = vmatmul.msk.f32.vlgmr.msrb.gmra.mxu1 %vm116_vm6, %v361_v7  ;;  %1651 = vmatmul.msk.f32.vlgmr.msra.gmra.mxu3 %vm116_vm6, %v361_v7 }
 0x63d   :  { %640 = vmatpush.msrb.mxu1 %v1939_v27  ;;  %839 = vmatpush.msra.mxu3 %v1939_v27 }
 0x63f   :  { %641 = vmatpush.msrb.mxu1 %v1951_v29  ;;  %840 = vmatpush.msra.mxu3 %v1951_v29 }
 0x641   :  { %642 = vmatpush.msrb.mxu1 %v1961_v31  ;;  %841 = vmatpush.msra.mxu3 %v1961_v31 }
 0x643   :  { %643 = vmatpush.msrb.mxu1 %v1974_v33  ;;  %842 = vmatpush.msra.mxu3 %v1974_v33 }
 0x680   :  { %v490_v8 = vpop.permute.xlu1 %489 }
 0x681   :  { %1650 = vmatmul.msk.f32.vlgmr.msra.gmra.mxu1 %vm116_vm6, %v490_v8 }
 0x682   :  { %1672 = vmatpush.msk.msra.mxu1 %vm50_vm0, %v1908_v0 }
 0x689   :  { %1661 = vmatmul.msk.f32.vlgmr.msrb.gmra.mxu1 %vm116_vm6, %v490_v8 }
 0x6b9   :  { %v2138_v12 = vpop.f32.mrf.mxu1 }
 0x6bf   :  { %v530_v10 = vpop.f32.mrf.mxu3 }
 0x6c0   :  { %v531_v11 = vadd.f32 %v530_v10, %v1996_v39 }
 0x6c2   :  { %554 = vrot.lane.b32.xlu2 %v531_v11, %s1862_s30 }
 0x6fe   :  { %v510_v13 = vpop.f32.mrf.mxu1 }
 0x6ff   :  { %v511_v14 = vadd.f32 %v510_v13, %v2002_v41 }
 0x701   :  { %v533_v15 = vadd.f32 %v531_v11, %v511_v14 }
 0x703   :  { %v1652_v16 = vmul.f32 -1.442695, %v533_v15 }
 0x705   :  { %1757 = vpow2.f32 %v1652_v16 }
 0x706   :  { %v645_v17 = vpop.f32.mrf.mxu1 }
 0x707   :  { %v646_v18 = vadd.f32 %v645_v17, %v1921_v3 }
 0x709   :  { %669 = vrot.lane.b32.xlu0 %v646_v18, %s1862_s30  ;;  %v648_v52 = vadd.f32 %v646_v18, %v626_v50 }
 0x70b   :  { %v1758_v19 = vpop.eup %1757  ;;  %v1662_v36 = vmul.f32 -1.442695, %v648_v52 }
 0x70c   :  { %v537_v20 = vadd.f32 1.0, %v1758_v19 }
 0x70e   :  { %1759 = vrcp.f32 %v537_v20  ;;  %v549_v24 = vand.u32 2147483648, %v537_v20  ;;  %v547_v34 = vand.u32 2147483647, %v537_v20  ;;  %vm543_vm11 = vweird.f32 %v537_v20 }
 0x70f   :  { %1761 = vpow2.f32 %v1662_v36 }
 0x710   :  { %v550_v42 = vor.u32 1.1754944e-38, %v549_v24  ;;  %vm548_vm13 = vcmp.eq.f32.partialorder %v547_v34, 8.507059e+37 }
 0x714   :  { %v1760_v21 = vpop.eup %1759 }
 0x715   :  { %v539_v22 = vmul.f32 %v1760_v21, %v537_v20  ;;  %vm544_vm10 = vweird.f32 %v1760_v21  ;;  %v1762_v53 = vpop.eup %1761  ;;  %v1655_v20 = vld [vmem:[%s2482_s5 + $0x50] sm:$0xff] }
 0x716   :  { %vm545_vm12 = vmor %vm543_vm11, %vm544_vm10  ;;  %v652_v54 = vadd.f32 1.0, %v1762_v53 }
 0x717   :  { %v540_v23 = vsub.f32 1.0, %v539_v22 }
 0x718   :  { %1763 = vrcp.f32 %v652_v54  ;;  %v664_v61 = vand.u32 2147483648, %v652_v54  ;;  %vm658_vm15 = vweird.f32 %v652_v54  ;;  %v662_v62 = vand.u32 2147483647, %v652_v54 }
 0x719   :  { %v541_v25 = vmul.f32 %v1760_v21, %v540_v23 }
 0x71a   :  { %v665_v63 = vor.u32 1.1754944e-38, %v664_v61  ;;  %vm663_vm3 = vcmp.eq.f32.partialorder %v662_v62, 8.507059e+37 }
 0x71b   :  { %v542_v38 = vadd.f32 %v1760_v21, %v541_v25 }
 0x71c   :  { %v555_v46 = vpop.permute.xlu2 %554 }
 0x71d   :  { %v546_v44 = vsel %vm545_vm12, %v1760_v21, %v542_v38  ;;  %v1654_v21 = vld [vmem:[%s2482_s5 + $0x48] sm:$0xff] }
 0x71e   :  { %v551_v47 = vsel %vm548_vm13, %v550_v42, %v546_v44  ;;  %v1764_v55 = vpop.eup %1763  ;;  %v402_v44 = vadd.f32 %v2134_v9, %v2138_v12 }
 0x71f   :  { %v557_v48 = vmul.f32 %v555_v46, %v551_v47  ;;  %v654_v56 = vmul.f32 %v1764_v55, %v652_v54  ;;  %vm659_vm14 = vweird.f32 %v1764_v55  ;;  %v564_v15 = vsub.f32 1.0, %v551_v47 }
 0x720   :  { %vm660_vm2 = vmor %vm658_vm15, %vm659_vm14  ;;  %v570_v17 = vmul.f32 %v551_v47, %v2091_v60  ;;  %v1653_v60 = vld [vmem:[%s2482_s5 + $0x40] sm:$0xff] }
 0x721   :  { %559 = vrot.lane.b32.xlu1 %v557_v48, %s1862_s30  ;;  %v655_v58 = vsub.f32 1.0, %v654_v56 }
 0x723   :  { %v656_v59 = vmul.f32 %v1764_v55, %v655_v58 }
 0x725   :  { %v657_v57 = vadd.f32 %v1764_v55, %v656_v59 }
 0x727   :  { %v661_v35 = vsel %vm660_vm2, %v1764_v55, %v657_v57 }
 0x728   :  { %v666_v2 = vsel %vm663_vm3, %v665_v63, %v661_v35 }
 0x729   :  { %v679_v22 = vsub.f32 1.0, %v666_v2  ;;  %v685_v24 = vmul.f32 %v666_v2, %v2112_v6  ;;  %v1671_v6 = vld [vmem:[%s2477_s0 + $0x8] sm:$0x3] }
 0x72a   :  { %1673 = vmatmul.msk.f32.vlgmr.msra.gmra.mxu1 %vm46_vm1, %v1671_v6 }
 0x77b   :  { %v670_v1 = vpop.permute.xlu0 %669 }
 0x77c   :  { %v672_v5 = vmul.f32 %v670_v1, %v666_v2 }
 0x77e   :  { %674 = vrot.lane.b32.xlu2 %v672_v5, %s1862_s30 }
 0x793   :  { %v560_v7 = vpop.permute.xlu1 %559 }
 0x794   :  { %v562_v51 = vadd.f32 %v560_v7, %v511_v14  ;;  %v1656_v14 = vld [vmem:[%s2482_s5 + $0x58] sm:$0xff] }
 0x795   :  { %594 = vmatpush.msrb.mxu0 %v1656_v14 }
 0x796   :  { %1765 = vtanh.f32 %v562_v51 }
 0x797   :  { %595 = vmatpush.msrb.mxu0 %v1655_v20 }
 0x799   :  { %596 = vmatpush.msrb.mxu0 %v1654_v21 }
 0x79b   :  { %597 = vmatpush.msrb.mxu0 %v1653_v60 }
 0x79c   :  { %v1766_v8 = vpop.eup %1765 }
 0x79d   :  { %566 = vrot.lane.b32.xlu0 %v1766_v8, %s1863_s8  ;;  %724 = vmatpush.msra.mxu0 %v2020_v37 }
 0x79f   :  { %725 = vmatpush.msra.mxu0 %v2028_v40 }
 0x7a1   :  { %726 = vmatpush.msra.mxu0 %v2037_v43 }
 0x7a3   :  { %727 = vmatpush.msra.mxu0 %v2046_v45 }
 0x7a7   :  { %v824_v7 = vpop.f32.mrf.mxu1 }
 0x7a8   :  { %v825_v51 = vadd.f32 %v824_v7, %v1925_v4 }
 0x7d8   :  { %v675_v10 = vpop.permute.xlu2 %674 }
 0x7d9   :  { %v677_v11 = vadd.f32 %v675_v10, %v626_v50 }
 0x7db   :  { %1767 = vtanh.f32 %v677_v11 }
 0x7e1   :  { %v1768_v13 = vpop.eup %1767 }
 0x7e2   :  { %681 = vrot.lane.b32.xlu1 %v1768_v13, %s1863_s8 }
 0x80f   :  { %v567_v16 = vpop.permute.xlu0 %566 }
 0x810   :  { %v569_v18 = vmul.f32 %v567_v16, %v564_v15 }
 0x812   :  { %v2149_v19 = vadd.f32 %v570_v17, %v569_v18 }
 0x814   :  { %578 = vrot.lane.b32.xlu2 %v2149_v19, %s1863_s8 }
 0x854   :  { %v682_v23 = vpop.permute.xlu1 %681 }
 0x855   :  { %v684_v25 = vmul.f32 %v682_v23, %v679_v22 }
 0x857   :  { %v2170_v34 = vadd.f32 %v685_v24, %v684_v25 }
 0x859   :  { %688 = vrot.lane.b32.xlu0 %v2170_v34, %s1863_s8 }
 0x86e   :  { %v579_v38 = vpop.permute.xlu2 %578 }
 0x86f   :  { %1657 = vmatmul.msk.f32.vlgmr.msrb.gmra.mxu0 %vm116_vm6, %v579_v38 }
 0x870   :  { %903 = vmatpush.msrb.mxu0 %v1934_v26 }
 0x872   :  { %904 = vmatpush.msrb.mxu0 %v1944_v28 }
 0x874   :  { %905 = vmatpush.msrb.mxu0 %v1956_v30 }
 0x876   :  { %906 = vmatpush.msrb.mxu0 %v1969_v32 }
 0x877   :  { %1664 = vmatmul.msk.f32.vlgmr.msra.gmra.mxu0 %vm116_vm6, %v579_v38 }
 0x878   :  { %1038 = vmatpush.msra.mxu0 %v1939_v27 }
 0x87a   :  { %1039 = vmatpush.msra.mxu0 %v1951_v29 }
 0x87c   :  { %1040 = vmatpush.msra.mxu0 %v1961_v31 }
 0x87e   :  { %1041 = vmatpush.msra.mxu0 %v1974_v33 }
 0x8cb   :  { %v689_v42 = vpop.permute.xlu0 %688 }
 0x8cc   :  { %1663 = vmatmul.msk.f32.vlgmr.msrb.gmra.mxu3 %vm116_vm6, %v689_v42 }
 0x8cd   :  { %1685 = vmatpush.msk.msrb.mxu3 %vm50_vm0, %v1908_v0 }
 0x8d4   :  { %1674 = vmatmul.msk.f32.vlgmr.msra.gmra.mxu3 %vm116_vm6, %v689_v42 }
 0x8ec   :  { %v599_v46 = vpop.f32.mrf.mxu0 }
 0x8ed   :  { %v2194_v47 = vadd.f32 %v599_v46, %v402_v44 }
 0x8f4   :  { %v729_v48 = vpop.f32.mrf.mxu0 }
 0x8f5   :  { %v730_v49 = vadd.f32 %v729_v48, %v1996_v39 }
 0x8f7   :  { %753 = vrot.lane.b32.xlu1 %v730_v49, %s1862_s30 }
 0x94f   :  { %v709_v50 = vpop.f32.mrf.mxu3 }
 0x950   :  { %v710_v52 = vadd.f32 %v709_v50, %v2002_v41 }
 0x952   :  { %v732_v36 = vadd.f32 %v730_v49, %v710_v52 }
 0x954   :  { %v1665_v53 = vmul.f32 -1.442695, %v732_v36 }
 0x956   :  { %1769 = vpow2.f32 %v1665_v53 }
 0x957   :  { %v844_v0 = vpop.f32.mrf.mxu3 }
 0x958   :  { %v845_v54 = vadd.f32 %v844_v0, %v1921_v3 }
 0x95a   :  { %868 = vrot.lane.b32.xlu2 %v845_v54, %s1862_s30  ;;  %v847_v8 = vadd.f32 %v845_v54, %v825_v51  ;;  %v1668_v54 = vld [vmem:[%s2482_s5 + $0x70] sm:$0xff] }
 0x95c   :  { %v1770_v9 = vpop.eup %1769  ;;  %v1675_v10 = vmul.f32 -1.442695, %v847_v8 }
 0x95d   :  { %v736_v12 = vadd.f32 1.0, %v1770_v9  ;;  %v1667_v9 = vld [vmem:[%s2482_s5 + $0x68] sm:$0xff] }
 0x95f   :  { %1771 = vrcp.f32 %v736_v12  ;;  %v748_v59 = vand.u32 2147483648, %v736_v12  ;;  %v746_v61 = vand.u32 2147483647, %v736_v12  ;;  %vm742_vm5 = vweird.f32 %v736_v12 }
 0x960   :  { %1773 = vpow2.f32 %v1675_v10 }
 0x961   :  { %v749_v35 = vor.u32 1.1754944e-38, %v748_v59  ;;  %vm747_vm8 = vcmp.eq.f32.partialorder %v746_v61, 8.507059e+37 }
 0x965   :  { %v1772_v55 = vpop.eup %1771 }
 0x966   :  { %v738_v56 = vmul.f32 %v1772_v55, %v736_v12  ;;  %vm743_vm4 = vweird.f32 %v1772_v55  ;;  %v1774_v11 = vpop.eup %1773 }
 0x967   :  { %vm744_vm7 = vmor %vm742_vm5, %vm743_vm4  ;;  %v851_v13 = vadd.f32 1.0, %v1774_v11 }
 0x968   :  { %v739_v58 = vsub.f32 1.0, %v738_v56 }
 0x969   :  { %v754_v2 = vpop.permute.xlu1 %753  ;;  %1775 = vrcp.f32 %v851_v13  ;;  %v863_v20 = vand.u32 2147483648, %v851_v13  ;;  %vm857_vm10 = vweird.f32 %v851_v13  ;;  %v861_v21 = vand.u32 2147483647, %v851_v13 }
 0x96a   :  { %v740_v57 = vmul.f32 %v1772_v55, %v739_v58 }
 0x96b   :  { %v864_v22 = vor.u32 1.1754944e-38, %v863_v20  ;;  %vm862_vm12 = vcmp.eq.f32.partialorder %v861_v21, 8.507059e+37 }
 0x96c   :  { %v741_v62 = vadd.f32 %v1772_v55, %v740_v57 }
 0x96e   :  { %v745_v63 = vsel %vm744_vm7, %v1772_v55, %v741_v62 }
 0x96f   :  { %v750_v1 = vsel %vm747_vm8, %v749_v35, %v745_v63  ;;  %v1776_v15 = vpop.eup %1775 }
 0x970   :  { %v756_v5 = vmul.f32 %v754_v2, %v750_v1  ;;  %v853_v16 = vmul.f32 %v1776_v15, %v851_v13  ;;  %vm858_vm9 = vweird.f32 %v1776_v15  ;;  %v763_v49 = vsub.f32 1.0, %v750_v1 }
 0x971   :  { %vm859_vm11 = vmor %vm857_vm10, %vm858_vm9  ;;  %v769_v36 = vmul.f32 %v750_v1, %v2149_v19  ;;  %v1666_v19 = vld [vmem:[%s2482_s5 + $0x60] sm:$0xff] }
 0x972   :  { %758 = vrot.lane.b32.xlu0 %v756_v5, %s1862_s30  ;;  %v854_v17 = vsub.f32 1.0, %v853_v16 }
 0x974   :  { %v855_v18 = vmul.f32 %v1776_v15, %v854_v17 }
 0x976   :  { %v856_v14 = vadd.f32 %v1776_v15, %v855_v18 }
 0x978   :  { %v860_v60 = vsel %vm859_vm11, %v1776_v15, %v856_v14 }
 0x979   :  { %v865_v24 = vsel %vm862_vm12, %v864_v22, %v860_v60 }
 0x97a   :  { %v878_v12 = vsub.f32 1.0, %v865_v24  ;;  %v884_v56 = vmul.f32 %v865_v24, %v2170_v34 }
 0x9b4   :  { %v869_v23 = vpop.permute.xlu2 %868 }
 0x9b5   :  { %v871_v25 = vmul.f32 %v869_v23, %v865_v24 }
 0x9b7   :  { %873 = vrot.lane.b32.xlu1 %v871_v25, %s1862_s30 }
 0x9e4   :  { %v759_v38 = vpop.permute.xlu0 %758 }
 0x9e5   :  { %v761_v6 = vadd.f32 %v759_v38, %v710_v52  ;;  %v1669_v52 = vld [vmem:[%s2482_s5 + $0x78] sm:$0xff] }
 0x9e6   :  { %793 = vmatpush.msra.mxu2 %v1669_v52 }
 0x9e7   :  { %1777 = vtanh.f32 %v761_v6 }
 0x9e8   :  { %794 = vmatpush.msra.mxu2 %v1668_v54 }
 0x9ea   :  { %795 = vmatpush.msra.mxu2 %v1667_v9 }
 0x9ec   :  { %796 = vmatpush.msra.mxu2 %v1666_v19 }
 0x9ed   :  { %v1778_v42 = vpop.eup %1777 }
 0x9ee   :  { %765 = vrot.lane.b32.xlu2 %v1778_v42, %s1863_s8  ;;  %923 = vmatpush.msrb.mxu2 %v2020_v37 }
 0x9f0   :  { %924 = vmatpush.msrb.mxu2 %v2028_v40 }
 0x9f2   :  { %925 = vmatpush.msrb.mxu2 %v2037_v43 }
 0x9f4   :  { %926 = vmatpush.msrb.mxu2 %v2046_v45 }
 0xa29   :  { %v874_v44 = vpop.permute.xlu1 %873 }
 0xa2a   :  { %v876_v46 = vadd.f32 %v874_v44, %v825_v51 }
 0xa2c   :  { %1779 = vtanh.f32 %v876_v46 }
 0xa32   :  { %v1780_v48 = vpop.eup %1779 }
 0xa33   :  { %880 = vrot.lane.b32.xlu0 %v1780_v48, %s1863_s8 }
 0xa48   :  { %v766_v50 = vpop.permute.xlu2 %765 }
 0xa49   :  { %v768_v53 = vmul.f32 %v766_v50, %v763_v49 }
 0xa4b   :  { %v2207_v0 = vadd.f32 %v769_v36, %v768_v53 }
 0xa4d   :  { %777 = vrot.lane.b32.xlu1 %v2207_v0, %s1863_s8 }
 0xaa5   :  { %v881_v55 = vpop.permute.xlu0 %880 }
 0xaa6   :  { %v883_v58 = vmul.f32 %v881_v55, %v878_v12 }
 0xaa8   :  { %v2228_v59 = vadd.f32 %v884_v56, %v883_v58 }
 0xaaa   :  { %887 = vrot.lane.b32.xlu2 %v2228_v59, %s1863_s8 }
 0xabf   :  { %v778_v57 = vpop.permute.xlu1 %777 }
 0xac0   :  { %1670 = vmatmul.msk.f32.vlgmr.msra.gmra.mxu2 %vm116_vm6, %v778_v57 }
 0xac1   :  { %1102 = vmatpush.msra.mxu2 %v1934_v26  ;;  %v1684_v26 = vld [vmem:[%s2477_s0 + $0xa] sm:$0x3] }
 0xac2   :  { %1686 = vmatmul.msk.f32.vlgmr.msrb.gmra.mxu3 %vm46_vm1, %v1684_v26 }
 0xac3   :  { %1103 = vmatpush.msra.mxu2 %v1944_v28 }
 0xac5   :  { %1104 = vmatpush.msra.mxu2 %v1956_v30  ;;  %v2250_v30 = vld [vmem:[%s2478_s1] sm:$0xf] }
 0xac7   :  { %1105 = vmatpush.msra.mxu2 %v1969_v32 }
 0xac8   :  { %1677 = vmatmul.msk.f32.vlgmr.msrb.gmra.mxu2 %vm116_vm6, %v778_v57 }
 0xac9   :  { %1237 = vmatpush.msrb.mxu2 %v1939_v27 }
 0xacb   :  { %1238 = vmatpush.msrb.mxu2 %v1951_v29 }
 0xacd   :  { %1239 = vmatpush.msrb.mxu2 %v1961_v31 }
 0xacf   :  { %1240 = vmatpush.msrb.mxu2 %v1974_v33 }
 0xb04   :  { %v888_v28 = vpop.permute.xlu2 %887 }
 0xb05   :  { %1676 = vmatmul.msk.f32.vlgmr.msrb.gmra.mxu0 %vm116_vm6, %v888_v28 }
 0xb06   :  { %1698 = vmatpush.msk.msrb.mxu0 %vm50_vm0, %v2250_v30 }
 0xb0d   :  { %1687 = vmatmul.msk.f32.vlgmr.msra.gmra.mxu0 %vm116_vm6, %v888_v28 }
 0xb43   :  { %v798_v27 = vpop.f32.mrf.mxu2 }
 0xb44   :  { %v2256_v29 = vadd.f32 %v798_v27, %v2194_v47  ;;  %v1682_v27 = vld [vmem:[%s2482_s5 + $0x98] sm:$0xff] }
 0xb45   :  { %v1023_v14 = vpop.f32.mrf.mxu3  ;;  %992 = vmatpush.msrb.mxu1 %v1682_v27 }
 0xb46   :  { %v1024_v20 = vadd.f32 %v1023_v14, %v1925_v4 }
 0xb4b   :  { %v928_v31 = vpop.f32.mrf.mxu2 }
 0xb4c   :  { %v929_v32 = vadd.f32 %v928_v31, %v1996_v39  ;;  %v1681_v31 = vld [vmem:[%s2482_s5 + $0x90] sm:$0xff] }
 0xb4d   :  { %993 = vmatpush.msrb.mxu1 %v1681_v31 }
 0xb4e   :  { %952 = vrot.lane.b32.xlu0 %v929_v32, %s1862_s30 }
 0xb82   :  { %v908_v33 = vpop.f32.mrf.mxu0 }
 0xb83   :  { %v909_v61 = vadd.f32 %v908_v33, %v2002_v41 }
 0xb85   :  { %v931_v35 = vadd.f32 %v929_v32, %v909_v61  ;;  %v1680_v32 = vld [vmem:[%s2482_s5 + $0x88] sm:$0xff] }
 0xb86   :  { %994 = vmatpush.msrb.mxu1 %v1680_v32 }
 0xb87   :  { %v1678_v63 = vmul.f32 -1.442695, %v931_v35 }
 0xb89   :  { %1781 = vpow2.f32 %v1678_v63 }
 0xb8a   :  { %v1043_v34 = vpop.f32.mrf.mxu0 }
 0xb8b   :  { %v1044_v62 = vadd.f32 %v1043_v34, %v1921_v3 }
 0xb8d   :  { %1067 = vrot.lane.b32.xlu1 %v1044_v62, %s1862_s30  ;;  %v1046_v21 = vadd.f32 %v1044_v62, %v1024_v20 }
 0xb8f   :  { %v1782_v1 = vpop.eup %1781  ;;  %v1688_v60 = vmul.f32 -1.442695, %v1046_v21 }
 0xb90   :  { %v935_v2 = vadd.f32 1.0, %v1782_v1  ;;  %v1829_v1 = vld [vmem:[%s2480_s3 + $0x10] sm:$0xff] }
 0xb92   :  { %1783 = vrcp.f32 %v935_v2  ;;  %v947_v10 = vand.u32 2147483648, %v935_v2  ;;  %vm941_vm14 = vweird.f32 %v935_v2  ;;  %v945_v11 = vand.u32 2147483647, %v935_v2 }
 0xb93   :  { %1785 = vpow2.f32 %v1688_v60 }
 0xb94   :  { %v948_v15 = vor.u32 1.1754944e-38, %v947_v10  ;;  %vm946_vm2 = vcmp.eq.f32.partialorder %v945_v11, 8.507059e+37 }
 0xb98   :  { %v1784_v47 = vpop.eup %1783 }
 0xb99   :  { %v937_v5 = vmul.f32 %v1784_v47, %v935_v2  ;;  %vm942_vm13 = vweird.f32 %v1784_v47  ;;  %v1786_v22 = vpop.eup %1785  ;;  %v1830_v2 = vld [vmem:[%s2480_s3 + $0x8] sm:$0xff] }
 0xb9a   :  { %vm943_vm15 = vmor %vm941_vm14, %vm942_vm13  ;;  %v1050_v23 = vadd.f32 1.0, %v1786_v22 }
 0xb9b   :  { %v938_v7 = vsub.f32 1.0, %v937_v5  ;;  %v1697_v5 = vld [vmem:[%s2477_s0 + $0xc] sm:$0x3] }
 0xb9c   :  { %1787 = vrcp.f32 %v1050_v23  ;;  %v1062_v44 = vand.u32 2147483648, %v1050_v23  ;;  %vm1056_vm4 = vweird.f32 %v1050_v23  ;;  %v1060_v46 = vand.u32 2147483647, %v1050_v23  ;;  %1699 = vmatmul.msk.f32.vlgmr.msrb.gmra.mxu0 %vm46_vm1, %v1697_v5 }
 0xb9d   :  { %v939_v51 = vmul.f32 %v1784_v47, %v938_v7 }
 0xb9e   :  { %v1063_v49 = vor.u32 1.1754944e-38, %v1062_v44  ;;  %vm1061_vm7 = vcmp.eq.f32.partialorder %v1060_v46, 8.507059e+37 }
 0xb9f   :  { %v940_v8 = vadd.f32 %v1784_v47, %v939_v51 }
 0xba1   :  { %v944_v13 = vsel %vm943_vm15, %v1784_v47, %v940_v8  ;;  %v1831_v47 = vld [vmem:[%s2480_s3] sm:$0xff] }
 0xba2   :  { %v949_v17 = vsel %vm946_vm2, %v948_v15, %v944_v13  ;;  %v1788_v24 = vpop.eup %1787 }
 0xba3   :  { %v1052_v25 = vmul.f32 %v1788_v24, %v1050_v23  ;;  %vm1057_vm3 = vweird.f32 %v1788_v24  ;;  %v962_v56 = vsub.f32 1.0, %v949_v17  ;;  %v968_v57 = vmul.f32 %v949_v17, %v2207_v0  ;;  %v1679_v0 = vld [vmem:[%s2482_s5 + $0x80] sm:$0xff] }
 0xba4   :  { %vm1058_vm5 = vmor %vm1056_vm4, %vm1057_vm3  ;;  %995 = vmatpush.msrb.mxu1 %v1679_v0 }
 0xba5   :  { %v1053_v38 = vsub.f32 1.0, %v1052_v25 }
 0xba6   :  { %1122 = vmatpush.msra.mxu1 %v2020_v37  ;;  %v2298_v37 = vld [vmem:[%s2479_s2 + $0x18] sm:$0xff] }
 0xba7   :  { %v1054_v6 = vmul.f32 %v1788_v24, %v1053_v38 }
 0xba8   :  { %1123 = vmatpush.msra.mxu1 %v2028_v40  ;;  %v2304_v40 = vld [vmem:[%s2479_s2 + $0x10] sm:$0xff] }
 0xba9   :  { %v1055_v42 = vadd.f32 %v1788_v24, %v1054_v6 }
 0xbaa   :  { %1124 = vmatpush.msra.mxu1 %v2037_v43  ;;  %v2310_v43 = vld [vmem:[%s2479_s2 + $0x8] sm:$0xff] }
 0xbab   :  { %v1059_v48 = vsel %vm1058_vm5, %v1788_v24, %v1055_v42 }
 0xbac   :  { %v1064_v50 = vsel %vm1061_vm7, %v1063_v49, %v1059_v48  ;;  %1125 = vmatpush.msra.mxu1 %v2046_v45  ;;  %v2316_v45 = vld [vmem:[%s2479_s2] sm:$0xff] }
 0xbad   :  { %v1077_v33 = vsub.f32 1.0, %v1064_v50 }
 0xbc0   :  { %v953_v16 = vpop.permute.xlu0 %952 }
 0xbc1   :  { %v955_v18 = vmul.f32 %v953_v16, %v949_v17 }
 0xbc3   :  { %957 = vrot.lane.b32.xlu2 %v955_v18, %s1862_s30 }
 0xbff   :  { %v1068_v36 = vpop.permute.xlu1 %1067 }
 0xc00   :  { %v1070_v53 = vmul.f32 %v1068_v36, %v1064_v50 }
 0xc02   :  { %1072 = vrot.lane.b32.xlu0 %v1070_v53, %s1862_s30 }
 0xc19   :  { %v1222_v48 = vpop.f32.mrf.mxu0 }
 0xc1a   :  { %v1223_v49 = vadd.f32 %v1222_v48, %v1925_v4 }
 0xc1d   :  { %v958_v52 = vpop.permute.xlu2 %957 }
 0xc1e   :  { %v960_v54 = vadd.f32 %v958_v52, %v909_v61  ;;  %v1083_v61 = vmul.f32 %v1064_v50, %v2228_v59  ;;  %v1828_v59 = vld [vmem:[%s2480_s3 + $0x18] sm:$0xff] }
 0xc20   :  { %1789 = vtanh.f32 %v960_v54 }
 0xc26   :  { %v1790_v9 = vpop.eup %1789 }
 0xc27   :  { %964 = vrot.lane.b32.xlu1 %v1790_v9, %s1863_s8 }
 0xc74   :  { %v1073_v19 = vpop.permute.xlu0 %1072 }
 0xc75   :  { %v1075_v12 = vadd.f32 %v1073_v19, %v1024_v20 }
 0xc77   :  { %1791 = vtanh.f32 %v1075_v12 }
 0xc7d   :  { %v1792_v55 = vpop.eup %1791 }
 0xc7e   :  { %1079 = vrot.lane.b32.xlu2 %v1792_v55, %s1863_s8 }
 0xc99   :  { %v965_v58 = vpop.permute.xlu1 %964 }
 0xc9a   :  { %v967_v26 = vmul.f32 %v965_v58, %v962_v56 }
 0xc9c   :  { %v2269_v28 = vadd.f32 %v968_v57, %v967_v26 }
 0xc9e   :  { %976 = vrot.lane.b32.xlu0 %v2269_v28, %s1863_s8 }
 0xcd8   :  { %v1080_v34 = vpop.permute.xlu2 %1079 }
 0xcd9   :  { %v1082_v62 = vmul.f32 %v1080_v34, %v1077_v33 }
 0xcdb   :  { %v2290_v35 = vadd.f32 %v1083_v61, %v1082_v62 }
 0xcdd   :  { %1086 = vrot.lane.b32.xlu1 %v2290_v35, %s1863_s8 }
 0xd10   :  { %v977_v63 = vpop.permute.xlu0 %976 }
 0xd11   :  { %1683 = vmatmul.msk.f32.vlgmr.msrb.gmra.mxu1 %vm116_vm6, %v977_v63 }
 0xd12   :  { %1301 = vmatpush.msrb.mxu1 %v2298_v37 }
 0xd14   :  { %1302 = vmatpush.msrb.mxu1 %v2304_v40 }
 0xd16   :  { %1303 = vmatpush.msrb.mxu1 %v2310_v43 }
 0xd18   :  { %1304 = vmatpush.msrb.mxu1 %v2316_v45 }
 0xd19   :  { %1690 = vmatmul.msk.f32.vlgmr.msra.gmra.mxu1 %vm116_vm6, %v977_v63 }
 0xd1a   :  { %1436 = vmatpush.msra.mxu1 %v1828_v59 }
 0xd1c   :  { %1437 = vmatpush.msra.mxu1 %v1829_v1 }
 0xd1e   :  { %1438 = vmatpush.msra.mxu1 %v1830_v2 }
 0xd20   :  { %1439 = vmatpush.msra.mxu1 %v1831_v47 }
 0xd4f   :  { %v1087_v7 = vpop.permute.xlu1 %1086 }
 0xd50   :  { %1689 = vmatmul.msk.f32.vlgmr.msra.gmra.mxu2 %vm116_vm6, %v1087_v7 }
 0xd51   :  { %1711 = vmatpush.msk.msra.mxu2 %vm50_vm0, %v2250_v30 }
 0xd58   :  { %1700 = vmatmul.msk.f32.vlgmr.msrb.gmra.mxu2 %vm116_vm6, %v1087_v7  ;;  %v1695_v7 = vld [vmem:[%s2482_s5 + $0xb8] sm:$0xff] }
 0xd59   :  { %1191 = vmatpush.msra.mxu3 %v1695_v7 }
 0xd8e   :  { %v997_v51 = vpop.f32.mrf.mxu1 }
 0xd8f   :  { %v2341_v8 = vadd.f32 %v997_v51, %v2256_v29  ;;  %v1694_v51 = vld [vmem:[%s2482_s5 + $0xb0] sm:$0xff] }
 0xd90   :  { %1192 = vmatpush.msra.mxu3 %v1694_v51 }
 0xd96   :  { %v1127_v10 = vpop.f32.mrf.mxu1 }
 0xd97   :  { %v1128_v11 = vadd.f32 %v1127_v10, %v1996_v39  ;;  %v1693_v10 = vld [vmem:[%s2482_s5 + $0xa8] sm:$0xff] }
 0xd98   :  { %1193 = vmatpush.msra.mxu3 %v1693_v10 }
 0xd99   :  { %1151 = vrot.lane.b32.xlu2 %v1128_v11, %s1862_s30 }
 0xdd3   :  { %v1107_v13 = vpop.f32.mrf.mxu2 }
 0xdd4   :  { %v1108_v15 = vadd.f32 %v1107_v13, %v2002_v41  ;;  %v2379_v13 = vld [vmem:[%s2480_s3 + $0x30] sm:$0xff] }
 0xdd6   :  { %v1130_v16 = vadd.f32 %v1128_v11, %v1108_v15  ;;  %v2373_v11 = vld [vmem:[%s2480_s3 + $0x38] sm:$0xff] }
 0xdd8   :  { %v1691_v17 = vmul.f32 -1.442695, %v1130_v16  ;;  %v2391_v16 = vld [vmem:[%s2480_s3 + $0x20] sm:$0xff] }
 0xdda   :  { %1793 = vpow2.f32 %v1691_v17 }
 0xddb   :  { %v1242_v18 = vpop.f32.mrf.mxu2 }
 0xddc   :  { %v1243_v30 = vadd.f32 %v1242_v18, %v1921_v3 }
 0xdde   :  { %1266 = vrot.lane.b32.xlu0 %v1243_v30, %s1862_s30  ;;  %v1245_v50 = vadd.f32 %v1243_v30, %v1223_v49 }
 0xde0   :  { %v1794_v14 = vpop.eup %1793  ;;  %v1701_v36 = vmul.f32 -1.442695, %v1245_v50 }
 0xde1   :  { %v1134_v20 = vadd.f32 1.0, %v1794_v14 }
 0xde3   :  { %1795 = vrcp.f32 %v1134_v20  ;;  %v1146_v22 = vand.u32 2147483648, %v1134_v20  ;;  %v1144_v24 = vand.u32 2147483647, %v1134_v20  ;;  %vm1140_vm8 = vweird.f32 %v1134_v20 }
 0xde4   :  { %1797 = vpow2.f32 %v1701_v36 }
 0xde5   :  { %v1147_v38 = vor.u32 1.1754944e-38, %v1146_v22  ;;  %vm1145_vm10 = vcmp.eq.f32.partialorder %v1144_v24, 8.507059e+37 }
 0xde9   :  { %v1796_v29 = vpop.eup %1795 }
 0xdea   :  { %v1136_v21 = vmul.f32 %v1796_v29, %v1134_v20  ;;  %vm1141_vm0 = vweird.f32 %v1796_v29  ;;  %v1798_v53 = vpop.eup %1797 }
 0xdeb   :  { %vm1142_vm9 = vmor %vm1140_vm8, %vm1141_vm0  ;;  %v1249_v52 = vadd.f32 1.0, %v1798_v53 }
 0xdec   :  { %v1137_v60 = vsub.f32 1.0, %v1136_v21 }
 0xded   :  { %1799 = vrcp.f32 %v1249_v52  ;;  %v1261_v56 = vand.u32 2147483648, %v1249_v52  ;;  %vm1255_vm12 = vweird.f32 %v1249_v52  ;;  %v1259_v58 = vand.u32 2147483647, %v1249_v52 }
 0xdee   :  { %v1138_v23 = vmul.f32 %v1796_v29, %v1137_v60 }
 0xdef   :  { %v1262_v26 = vor.u32 1.1754944e-38, %v1261_v56  ;;  %vm1260_vm14 = vcmp.eq.f32.partialorder %v1259_v58, 8.507059e+37 }
 0xdf0   :  { %v1139_v25 = vadd.f32 %v1796_v29, %v1138_v23 }
 0xdf2   :  { %v1143_v6 = vsel %vm1142_vm9, %v1796_v29, %v1139_v25 }
 0xdf3   :  { %v1152_v42 = vpop.permute.xlu2 %1151  ;;  %v1148_v44 = vsel %vm1145_vm10, %v1147_v38, %v1143_v6  ;;  %v1800_v54 = vpop.eup %1799 }
 0xdf4   :  { %v1154_v46 = vmul.f32 %v1152_v42, %v1148_v44  ;;  %v1251_v9 = vmul.f32 %v1800_v54, %v1249_v52  ;;  %vm1256_vm11 = vweird.f32 %v1800_v54  ;;  %v1161_v59 = vsub.f32 1.0, %v1148_v44 }
 0xdf5   :  { %vm1257_vm13 = vmor %vm1255_vm12, %vm1256_vm11  ;;  %v1167_v2 = vmul.f32 %v1148_v44, %v2269_v28  ;;  %v1692_v28 = vld [vmem:[%s2482_s5 + $0xa0] sm:$0xff]  ;;  %vm1603_vm12 = vcmask 74752  }
 0xdf6   :  { %1156 = vrot.lane.b32.xlu1 %v1154_v46, %s1862_s30  ;;  %v1252_v19 = vsub.f32 1.0, %v1251_v9  ;;  %1194 = vmatpush.msra.mxu3 %v1692_v28 }
 0xdf8   :  { %v1253_v12 = vmul.f32 %v1800_v54, %v1252_v19  ;;  %1321 = vmatpush.msrb.mxu3 %v2373_v11 }
 0xdfa   :  { %v1254_v55 = vadd.f32 %v1800_v54, %v1253_v12  ;;  %1322 = vmatpush.msrb.mxu3 %v2379_v13 }
 0xdfc   :  { %v1258_v57 = vsel %vm1257_vm13, %v1800_v54, %v1254_v55 }
 0xdfd   :  { %v1263_v31 = vsel %vm1260_vm14, %v1262_v26, %v1258_v57 }
 0xdfe   :  { %v1276_v17 = vsub.f32 1.0, %v1263_v31  ;;  %v1282_v30 = vmul.f32 %v1263_v31, %v2290_v35  ;;  %v1710_v35 = vld [vmem:[%s2477_s0 + $0xe] sm:$0x3] }
 0xdff   :  { %1712 = vmatmul.msk.f32.vlgmr.msra.gmra.mxu2 %vm46_vm1, %v1710_v35  ;;  %v1707_v35 = vld [vmem:[%s2482_s5 + $0xd0] sm:$0xff] }
 0xe50   :  { %v1267_v27 = vpop.permute.xlu0 %1266 }
 0xe51   :  { %v1269_v32 = vmul.f32 %v1267_v27, %v1263_v31 }
 0xe53   :  { %1271 = vrot.lane.b32.xlu2 %v1269_v32, %s1862_s30 }
 0xe68   :  { %v1157_v0 = vpop.permute.xlu1 %1156 }
 0xe69   :  { %v1159_v33 = vadd.f32 %v1157_v0, %v1108_v15  ;;  %v2385_v15 = vld [vmem:[%s2480_s3 + $0x28] sm:$0xff] }
 0xe6a   :  { %1323 = vmatpush.msrb.mxu3 %v2385_v15 }
 0xe6b   :  { %1801 = vtanh.f32 %v1159_v33 }
 0xe6c   :  { %1324 = vmatpush.msrb.mxu3 %v2391_v16 }
 0xe71   :  { %v1802_v34 = vpop.eup %1801 }
 0xe72   :  { %1163 = vrot.lane.b32.xlu0 %v1802_v34, %s1863_s8 }
 0xe82   :  { %v1421_v19 = vpop.f32.mrf.mxu2 }
 0xe83   :  { %v1422_v12 = vadd.f32 %v1421_v19, %v1925_v4 }
 0xead   :  { %v1272_v61 = vpop.permute.xlu2 %1271 }
 0xeae   :  { %v1274_v62 = vadd.f32 %v1272_v61, %v1223_v49 }
 0xeb0   :  { %1803 = vtanh.f32 %v1274_v62 }
 0xeb6   :  { %v1804_v63 = vpop.eup %1803 }
 0xeb7   :  { %1278 = vrot.lane.b32.xlu1 %v1804_v63, %s1863_s8 }
 0xee4   :  { %v1164_v1 = vpop.permute.xlu0 %1163 }
 0xee5   :  { %v1166_v47 = vmul.f32 %v1164_v1, %v1161_v59 }
 0xee7   :  { %v2354_v5 = vadd.f32 %v1167_v2, %v1166_v47 }
 0xee9   :  { %1175 = vrot.lane.b32.xlu2 %v2354_v5, %s1863_s8 }
 0xf29   :  { %v1279_v18 = vpop.permute.xlu1 %1278 }
 0xf2a   :  { %v1281_v14 = vmul.f32 %v1279_v18, %v1276_v17 }
 0xf2c   :  { %v2395_v20 = vadd.f32 %v1282_v30, %v1281_v14 }
 0xf2e   :  { %1285 = vrot.lane.b32.xlu0 %v2395_v20, %s1863_s8 }
 0xf43   :  { %v1176_v29 = vpop.permute.xlu2 %1175 }
 0xf44   :  { %1696 = vmatmul.msk.f32.vlgmr.msra.gmra.mxu3 %vm116_vm6, %v1176_v29 }
 0xf45   :  { %1500 = vmatpush.msra.mxu3 %v2298_v37 }
 0xf47   :  { %1501 = vmatpush.msra.mxu3 %v2304_v40 }
 0xf49   :  { %1502 = vmatpush.msra.mxu3 %v2310_v43 }
 0xf4b   :  { %1503 = vmatpush.msra.mxu3 %v2316_v45 }
 0xf4c   :  { %1703 = vmatmul.msk.f32.vlgmr.msrb.gmra.mxu3 %vm116_vm6, %v1176_v29  ;;  %v1708_v29 = vld [vmem:[%s2482_s5 + $0xd8] sm:$0xff] }
 0xf4d   :  { %1390 = vmatpush.msra.mxu0 %v1708_v29 }
 0xf4f   :  { %1391 = vmatpush.msra.mxu0 %v1707_v35 }
 0xfa0   :  { %v1286_v21 = vpop.permute.xlu0 %1285 }
 0xfa1   :  { %1702 = vmatmul.msk.f32.vlgmr.msrb.gmra.mxu1 %vm116_vm6, %v1286_v21 }
 0xfa9   :  { %1713 = vmatmul.msk.f32.vlgmr.msra.gmra.mxu1 %vm116_vm6, %v1286_v21  ;;  %v1706_v21 = vld [vmem:[%s2482_s5 + $0xc8] sm:$0xff] }
 0xfaa   :  { %1392 = vmatpush.msra.mxu0 %v1706_v21 }
 0xfc7   :  { %v1196_v37 = vpop.f32.mrf.mxu3 }
 0xfc8   :  { %v2412_v40 = vadd.f32 %v1196_v37, %v2341_v8 }
 0xfcf   :  { %v1326_v43 = vpop.f32.mrf.mxu3 }
 0xfd0   :  { %v1327_v45 = vadd.f32 %v1326_v43, %v1996_v39 }
 0xfd2   :  { %1350 = vrot.lane.b32.xlu1 %v1327_v45, %s1862_s30 }
0x101e   :  { %v1306_v60 = vpop.f32.mrf.mxu1 }
0x101f   :  { %v1307_v22 = vadd.f32 %v1306_v60, %v2002_v41 }
0x1021   :  { %v1329_v23 = vadd.f32 %v1327_v45, %v1307_v22 }
0x1023   :  { %v1704_v24 = vmul.f32 -1.442695, %v1329_v23 }
0x1025   :  { %1805 = vpow2.f32 %v1704_v24 }
0x1026   :  { %v1441_v25 = vpop.f32.mrf.mxu1 }
0x1027   :  { %v1442_v38 = vadd.f32 %v1441_v25, %v1921_v3 }
0x1029   :  { %1465 = vrot.lane.b32.xlu2 %v1442_v38, %s1862_s30  ;;  %v1444_v55 = vadd.f32 %v1442_v38, %v1422_v12 }
0x102b   :  { %v1806_v6 = vpop.eup %1805  ;;  %v1714_v56 = vmul.f32 -1.442695, %v1444_v55  ;;  %v1720_v55 = vld [vmem:[%s2482_s5 + $0xf0] sm:$0xff] }
0x102c   :  { %v1333_v42 = vadd.f32 1.0, %v1806_v6 }
0x102e   :  { %1807 = vrcp.f32 %v1333_v42  ;;  %v1345_v50 = vand.u32 2147483648, %v1333_v42  ;;  %vm1339_vm15 = vweird.f32 %v1333_v42  ;;  %v1343_v36 = vand.u32 2147483647, %v1333_v42 }
0x102f   :  { %1809 = vpow2.f32 %v1714_v56  ;;  %v1719_v56 = vld [vmem:[%s2482_s5 + $0xe8] sm:$0xff] }
0x1030   :  { %v1346_v52 = vor.u32 1.1754944e-38, %v1345_v50  ;;  %vm1344_vm3 = vcmp.eq.f32.partialorder %v1343_v36, 8.507059e+37 }
0x1034   :  { %v1808_v8 = vpop.eup %1807 }
0x1035   :  { %v1335_v44 = vmul.f32 %v1808_v8, %v1333_v42  ;;  %vm1340_vm1 = vweird.f32 %v1808_v8  ;;  %v1810_v58 = vpop.eup %1809 }
0x1036   :  { %vm1341_vm2 = vmor %vm1339_vm15, %vm1340_vm1  ;;  %v1448_v57 = vadd.f32 1.0, %v1810_v58  ;;  %v1718_v58 = vld [vmem:[%s2482_s5 + $0xe0] sm:$0xff] }
0x1037   :  { %v1336_v46 = vsub.f32 1.0, %v1335_v44 }
0x1038   :  { %1811 = vrcp.f32 %v1448_v57  ;;  %v1460_v33 = vand.u32 2147483648, %v1448_v57  ;;  %vm1454_vm5 = vweird.f32 %v1448_v57  ;;  %v1458_v34 = vand.u32 2147483647, %v1448_v57 }
0x1039   :  { %v1337_v48 = vmul.f32 %v1808_v8, %v1336_v46 }
0x103a   :  { %v1461_v62 = vor.u32 1.1754944e-38, %v1460_v33  ;;  %vm1459_vm0 = vcmp.eq.f32.partialorder %v1458_v34, 8.507059e+37  ;;  %v1726_v33 = vld [vmem:[%s2483_s6] ss:$0 sm:$0xff] }
0x103b   :  { %v1338_v49 = vadd.f32 %v1808_v8, %v1337_v48 }
0x103d   :  { %v1342_v53 = vsel %vm1341_vm2, %v1808_v8, %v1338_v49 }
0x103e   :  { %v1347_v54 = vsel %vm1344_vm3, %v1346_v52, %v1342_v53  ;;  %v1812_v26 = vpop.eup %1811 }
0x103f   :  { %v1450_v27 = vmul.f32 %v1812_v26, %v1448_v57  ;;  %vm1455_vm4 = vweird.f32 %v1812_v26  ;;  %v1360_v28 = vsub.f32 1.0, %v1347_v54  ;;  %v1366_v18 = vmul.f32 %v1347_v54, %v2354_v5  ;;  %v1705_v5 = vld [vmem:[%s2482_s5 + $0xc0] sm:$0xff] }
0x1040   :  { %vm1456_vm7 = vmor %vm1454_vm5, %vm1455_vm4  ;;  %1393 = vmatpush.msra.mxu0 %v1705_v5 }
0x1041   :  { %v1451_v31 = vsub.f32 1.0, %v1450_v27 }
0x1042   :  { %1520 = vmatpush.msrb.mxu0 %v2373_v11 }
0x1043   :  { %v1452_v32 = vmul.f32 %v1812_v26, %v1451_v31 }
0x1044   :  { %v1351_v3 = vpop.permute.xlu1 %1350  ;;  %1521 = vmatpush.msrb.mxu0 %v2379_v13 }
0x1045   :  { %v1353_v9 = vmul.f32 %v1351_v3, %v1347_v54  ;;  %v1453_v0 = vadd.f32 %v1812_v26, %v1452_v32 }
0x1046   :  { %1522 = vmatpush.msrb.mxu0 %v2385_v15 }
0x1047   :  { %1355 = vrot.lane.b32.xlu0 %v1353_v9, %s1862_s30  ;;  %v1457_v61 = vsel %vm1456_vm7, %v1812_v26, %v1453_v0 }
0x1048   :  { %v1462_v63 = vsel %vm1459_vm0, %v1461_v62, %v1457_v61  ;;  %1523 = vmatpush.msrb.mxu0 %v2391_v16 }
0x1049   :  { %v1475_v37 = vsub.f32 1.0, %v1462_v63  ;;  %v1481_v45 = vmul.f32 %v1462_v63, %v2395_v20 }
0x1083   :  { %v1466_v4 = vpop.permute.xlu2 %1465 }
0x1084   :  { %v1468_v59 = vmul.f32 %v1466_v4, %v1462_v63 }
0x1086   :  { %1470 = vrot.lane.b32.xlu1 %v1468_v59, %s1862_s30 }
0x10b9   :  { %v1356_v1 = vpop.permute.xlu0 %1355 }
0x10ba   :  { %v1358_v2 = vadd.f32 %v1356_v1, %v1307_v22 }
0x10bc   :  { %1813 = vtanh.f32 %v1358_v2 }
0x10c2   :  { %v1814_v47 = vpop.eup %1813 }
0x10c3   :  { %1362 = vrot.lane.b32.xlu2 %v1814_v47, %s1863_s8 }
0x10f8   :  { %v1471_v7 = vpop.permute.xlu1 %1470 }
0x10f9   :  { %v1473_v51 = vadd.f32 %v1471_v7, %v1422_v12  ;;  %v1721_v12 = vld [vmem:[%s2482_s5 + $0xf8] sm:$0xff]  ;;  %s1610_s5 = sshll.u32 %s1864_s23, 4  ;;  %s1611_s5 = int_to_ptr.vmem [resolvable:$true] %s1610_s5 }
0x10fa   :  { %1589 = vmatpush.msrb.mxu2 %v1721_v12 }
0x10fb   :  { %1815 = vtanh.f32 %v1473_v51 }
0x10fc   :  { %1590 = vmatpush.msrb.mxu2 %v1720_v55 }
0x10fe   :  { %1591 = vmatpush.msrb.mxu2 %v1719_v56 }
0x1100   :  { %1592 = vmatpush.msrb.mxu2 %v1718_v58 }
0x1101   :  { %v1816_v10 = vpop.eup %1815 }
0x1102   :  { %1477 = vrot.lane.b32.xlu0 %v1816_v10, %s1863_s8 }
0x111d   :  { %v1363_v17 = vpop.permute.xlu2 %1362 }
0x111e   :  { %v1365_v30 = vmul.f32 %v1363_v17, %v1360_v28 }
0x1120   :  { %v2425_v14 = vadd.f32 %v1366_v18, %v1365_v30 }
0x1122   :  { %1374 = vrot.lane.b32.xlu1 %v2425_v14, %s1863_s8 }
0x1174   :  { %v1478_v43 = vpop.permute.xlu0 %1477 }
0x1175   :  { %v1480_v60 = vmul.f32 %v1478_v43, %v1475_v37 }
0x1177   :  { %v1482_v22 = vadd.f32 %v1481_v45, %v1480_v60 }
0x1179   :  { %1484 = vrot.lane.b32.xlu2 %v1482_v22, %s1863_s8 }
0x1194   :  { %v1375_v23 = vpop.permute.xlu1 %1374 }
0x1195   :  { %1709 = vmatmul.msk.f32.vlgmr.msra.gmra.mxu0 %vm116_vm6, %v1375_v23 }
0x119d   :  { %1716 = vmatmul.msk.f32.vlgmr.msrb.gmra.mxu0 %vm116_vm6, %v1375_v23 }
0x11d3   :  { %v1485_v11 = vpop.permute.xlu2 %1484 }
0x11d4   :  { %1715 = vmatmul.msk.f32.vlgmr.msra.gmra.mxu3 %vm116_vm6, %v1485_v11 }
0x1212   :  { %v1395_v13 = vpop.f32.mrf.mxu0 }
0x1213   :  { %v1398_v15 = vadd.f32 %v1395_v13, %v2412_v40 }
0x121a   :  { %v1525_v16 = vpop.f32.mrf.mxu0 }
0x121b   :  { %v1526_v24 = vadd.f32 %v1525_v16, %v1996_v39 }
0x121d   :  { %1549 = vrot.lane.b32.xlu0 %v1526_v24, %s1862_s30 }
0x1257   :  { %v1505_v20 = vpop.f32.mrf.mxu3 }
0x1258   :  { %v1506_v25 = vadd.f32 %v1505_v20, %v2002_v41 }
0x125a   :  { %v1528_v38 = vadd.f32 %v1526_v24, %v1506_v25 }
0x125c   :  { %v1717_v6 = vmul.f32 -1.442695, %v1528_v38 }
0x125e   :  { %1817 = vpow2.f32 %v1717_v6 }
0x1264   :  { %v1818_v42 = vpop.eup %1817 }
0x1265   :  { %v1532_v8 = vadd.f32 1.0, %v1818_v42 }
0x1267   :  { %1819 = vrcp.f32 %v1532_v8  ;;  %v1544_v40 = vand.u32 2147483648, %v1532_v8  ;;  %vm1538_vm9 = vweird.f32 %v1532_v8  ;;  %v1542_v39 = vand.u32 2147483647, %v1532_v8 }
0x1269   :  { %v1545_v53 = vor.u32 1.1754944e-38, %v1544_v40  ;;  %vm1543_vm11 = vcmp.eq.f32.partialorder %v1542_v39, 8.507059e+37 }
0x126d   :  { %v1820_v44 = vpop.eup %1819 }
0x126e   :  { %v1534_v46 = vmul.f32 %v1820_v44, %v1532_v8  ;;  %vm1539_vm8 = vweird.f32 %v1820_v44 }
0x126f   :  { %vm1540_vm10 = vmor %vm1538_vm9, %vm1539_vm8 }
0x1270   :  { %v1535_v48 = vsub.f32 1.0, %v1534_v46 }
0x1272   :  { %v1536_v49 = vmul.f32 %v1820_v44, %v1535_v48 }
0x1274   :  { %v1537_v50 = vadd.f32 %v1820_v44, %v1536_v49 }
0x1276   :  { %v1541_v36 = vsel %vm1540_vm10, %v1820_v44, %v1537_v50 }
0x1277   :  { %v1546_v52 = vsel %vm1543_vm11, %v1545_v53, %v1541_v36 }
0x1278   :  { %v1559_v57 = vsub.f32 1.0, %v1546_v52  ;;  %v1565_v27 = vmul.f32 %v1546_v52, %v2425_v14 }
0x128f   :  { %v1550_v41 = vpop.permute.xlu0 %1549 }
0x1290   :  { %v1552_v54 = vmul.f32 %v1550_v41, %v1546_v52 }
0x1292   :  { %1554 = vrot.lane.b32.xlu1 %v1552_v54, %s1862_s30 }
0x1304   :  { %v1555_v3 = vpop.permute.xlu1 %1554 }
0x1305   :  { %v1557_v9 = vadd.f32 %v1555_v3, %v1506_v25 }
0x1307   :  { %1821 = vtanh.f32 %v1557_v9 }
0x130d   :  { %v1822_v19 = vpop.eup %1821 }
0x130e   :  { %1561 = vrot.lane.b32.xlu2 %v1822_v19, %s1863_s8 }
0x1368   :  { %v1562_v26 = vpop.permute.xlu2 %1561 }
0x1369   :  { %v1564_v31 = vmul.f32 %v1562_v26, %v1559_v57 }
0x136b   :  { %v1566_v32 = vadd.f32 %v1565_v27, %v1564_v31 }
0x136d   :  { %1573 = vrot.lane.b32.xlu0 %v1566_v32, %s1863_s8 }
0x13df   :  { %v1574_v0 = vpop.permute.xlu0 %1573 }
0x13e0   :  { %1722 = vmatmul.msk.f32.vlgmr.msrb.gmra.mxu2 %vm116_vm6, %v1574_v0 }
0x1463   :  { %v1594_v34 = vpop.f32.mrf.mxu2 }
0x1464   :  { %v1597_v61 = vadd.f32 %v1594_v34, %v1398_v15 }
0x1466   :  { %v1602_v62 = vadd.f32 %v1726_v33, %v1597_v61 }
0x1468   :  { %1604 = vst.msk [vmem:[#allocation2] sm:$0x3] %vm1603_vm12, %v1602_v62 }
0x1469   :  { %1615 = dma.vmem_to_hbm [thread:$0]  %s1611_s5, 32, %s1613_s26, [#allocation3]  }
0x146a   :  { %1860 = dma.done.wait [#allocation3], 32  }
0x146b   :  { %1861 = vsyncadd [#allocation3], 4294967264 }
0x146c   :  { %1620 = vsyncpa [#allocation3], 1 }

</bundles_post_ra>
